<compile_context>
chip_gen: v6e
topology: v6e:2x2x1
jax: 0.10.0
libtpu: 0.0.40
codegen_flags: <defaults>
</compile_context>

<pallas_src>
import jax
import jax.numpy as jnp
from jax.experimental import pallas as pl
from jax.experimental.pallas import tpu as pltpu

# ----------------------------- config (synthetic) ---------------------------
NUM_SPECIAL = 4          # stand-in for data.NUM_SPECIAL
SOS_ID = 1

EMB = 32                 # embedding_size
HID = 32                 # hidden_size
LAYERS = 2               # stacked GRU layers
VOCAB_WORDS = 64         # word-embedding vocab (for the lookup glue)
VOCAB_OUT = 16           # generator output vocab
T = 8                    # sequence length
B = 4                    # batch
IN_SIZE = EMB + HID + 1  # input_feeding=True: emb + hidden + length_countdown


# ------------------------------- Pallas kernel ------------------------------
def make_decoder_kernel(num_layers, hidden_size, seq_len, batch,
                        bias_off, gw_off, gb_off):
    H = hidden_size
    L = num_layers
    f32 = jnp.float32

    def kernel(gix_ref, wslab_ref, state0_ref, scores_ref, hN_ref, outs_ref):
        # ---- unpack the packed weight slab with static (8-row aligned) slices ----
        Ws = [wslab_ref[2 * H * l:2 * H * (l + 1), :] for l in range(L)]      # (2H,4H)
        bdeep = [wslab_ref[bias_off + 8 * (l - 1):bias_off + 8 * (l - 1) + 1, :]
                 for l in range(1, L)]                                         # (1,4H)
        wgk = wslab_ref[gw_off:gw_off + H, :]                                  # (H,4H)
        bgk = wslab_ref[gb_off:gb_off + 1, :]                                  # (1,4H)

        # carried state (values, loaded once)
        h = [state0_ref[l] for l in range(L)]          # (B, H) each
        out = state0_ref[L]                            # (B, H) = prev_output

        def gru_update(pre, hp):
            # pre: (B, 4H) laid out as [gi_r+gh_r | gi_z+gh_z | gi_n | gh_n]
            r = jax.nn.sigmoid(pre[:, 0:H])
            z = jax.nn.sigmoid(pre[:, H:2 * H])
            n = jnp.tanh(pre[:, 2 * H:3 * H] + r * pre[:, 3 * H:4 * H])
            return (1.0 - z) * n + z * hp

        # fully unrolled recurrence (T is small; switch to lax.fori_loop if T grows)
        for t in range(seq_len):
            # ---- layer 0: one fused (B,2H)x(2H,4H) dot; x-proj + biases hoisted ----
            xh = jnp.concatenate([out, h[0]], axis=1)                   # (B, 2H)
            pre = gix_ref[t] + jnp.dot(xh, Ws[0], preferred_element_type=f32)
            h[0] = gru_update(pre, h[0])
            inp = h[0]

            # ---- layers 1..L-1: same fused-gate structure ----
            for l in range(1, L):
                xh = jnp.concatenate([inp, h[l]], axis=1)               # (B, 2H)
                pre = bdeep[l - 1] + jnp.dot(xh, Ws[l], preferred_element_type=f32)
                h[l] = gru_update(pre, h[l])
                inp = h[l]

            out = inp
            # TODO(synk): GlobalAttention + dropout omitted (source missing / p=0 eval)
            # stash per-step output in VMEM scratch (static slice)
            outs_ref[t * batch:(t + 1) * batch, :] = out

        # ---- final states (written once) ----
        for l in range(L):
            hN_ref[l] = h[l]

        # ---- hoisted generator: one batched matmul + vectorized log_softmax ----
        allout = outs_ref[...]                                           # (T*B, H)
        logits = jnp.dot(allout, wgk, preferred_element_type=f32) + bgk  # (T*B, 4H)
        m = jnp.max(logits, axis=-1, keepdims=True)
        lse = jnp.log(jnp.sum(jnp.exp(logits - m), axis=-1, keepdims=True)) + m
        scores_ref[...] = logits - lse                                   # lane-dense store

    return kernel


def rnn_decoder_pallas(rnn_input, h0, out0, layer_params, wg, bg):
    """rnn_input: (T, B, EMB+1) f32; h0: (L, B, H); out0: (B, H)."""
    T_, B_, E1 = rnn_input.shape
    L, _, H = h0.shape
    V = wg.shape[0]
    WIDTH = 4 * H
    assert V <= WIDTH
    f32 = jnp.float32

    def gates(w):  # (3H, ...) -> per-gate slices [r, z, n]
        return w[0:H], w[H:2 * H], w[2 * H:3 * H]

    # ---------------- layer 0: hoisted, bias-folded x-projection ----------------
    wih0, whh0, bih0, bhh0 = layer_params[0]
    gi0 = gates(wih0); gh0 = gates(whh0)
    gbi0 = gates(bih0); gbh0 = gates(bhh0)

    # one fused (T*B, E1) x (E1, 3H) matmul; b_ih (+ b_hh for r/z) folded in
    Wx = jnp.concatenate([gi0[g][:, :E1].T for g in range(3)], axis=1)    # (E1, 3H)
    bias3 = jnp.concatenate([gbi0[0] + gbh0[0], gbi0[1] + gbh0[1], gbi0[2]])
    x2d = rnn_input.reshape(T_ * B_, E1)
    gix3 = x2d @ Wx + bias3                                               # (T*B, 3H)
    # 4th block carries bh_n (must stay inside r*(.) -> cannot fold into gix_n)
    bhn_col = jnp.broadcast_to(gbh0[2], (T_ * B_, H))
    gix = jnp.concatenate([gix3, bhn_col], axis=1).reshape(T_, B_, WIDTH)  # (T,B,4H)

    # ---------------- fused per-layer gate weights (2H, 4H) ---------------------
    def fuse_layer(wih_in, whh):
        # column blocks: [r | z | n_input | n_hidden]
        gi = gates(wih_in); gh = gates(whh)
        zero = jnp.zeros((H, H), f32)
        top = jnp.concatenate([gi[0].T, gi[1].T, gi[2].T, zero], axis=1)  # input rows
        bot = jnp.concatenate([gh[0].T, gh[1].T, zero, gh[2].T], axis=1)  # hidden rows
        return jnp.concatenate([top, bot], axis=0)                        # (2H, 4H)

    w_fused = [fuse_layer(wih0[:, E1:], whh0)]     # layer 0: input-fed part only
    deep_bias_rows = []
    for (wih, whh, bih, bhh) in layer_params[1:]:
        w_fused.append(fuse_layer(wih, whh))
        gbi = gates(bih); gbh = gates(bhh)
        deep_bias_rows.append(jnp.concatenate(
            [gbi[0] + gbh[0], gbi[1] + gbh[1], gbi[2], gbh[2]]))          # (4H,)

    # ---------------- pack everything into ONE 8-row-aligned weight slab --------
    rows = list(w_fused)                                   # 2H rows per layer
    bias_off = 2 * H * L
    for brow in deep_bias_rows:                            # 8 rows per deep layer
        rows.append(jnp.zeros((8, WIDTH), f32).at[0].set(brow))
    gw_off = bias_off + 8 * (L - 1)
    gw_rows = ((H + 7) // 8) * 8
    # generator: pad vocab to 4H lanes (zero weights, -1e30 bias -> exact log_softmax)
    rows.append(jnp.zeros((gw_rows, WIDTH), f32).at[:H, :V].set(wg.T))
    gb_off = gw_off + gw_rows
    bg_pad = jnp.full((WIDTH,), -1e30, f32).at[:V].set(bg)
    rows.append(jnp.zeros((8, WIDTH), f32).at[0].set(bg_pad))
    wslab = jnp.concatenate(rows, axis=0)                  # (2HL + 8(L-1) + gw_rows + 8, 4H)

    # initial state: h0 layers + prev_output stacked
    state0 = jnp.concatenate([h0, out0[None]], axis=0)     # (L+1, B, H)

    def resident(shape):
        zeros = (0,) * len(shape)
        return pl.BlockSpec(shape, lambda i, _z=zeros: _z)

    in_arrays = [gix, wslab, state0]
    in_specs = [resident(a.shape) for a in in_arrays]

    out_shape = (
        jax.ShapeDtypeStruct((T_ * B_, WIDTH), jnp.float32),   # padded log-probs
        jax.ShapeDtypeStruct((L, B_, H), jnp.float32),         # final hidden
    )
    out_specs = (
        resident((T_ * B_, WIDTH)),
        resident((L, B_, H)),
    )

    grid_spec = pltpu.PrefetchScalarGridSpec(
        num_scalar_prefetch=0,
        grid=(1,),                    # single grid step; recurrence unrolled in-kernel
        in_specs=in_specs,
        out_specs=out_specs,
        scratch_shapes=[pltpu.VMEM((T_ * B_, H), jnp.float32)],   # per-t RNN outputs
    )

    scores_flat, hidden_out = pl.pallas_call(
        make_decoder_kernel(L, H, T_, B_, bias_off, gw_off, gb_off),
        out_shape=out_shape,
        grid_spec=grid_spec,
        compiler_params=pltpu.CompilerParams(
            dimension_semantics=("arbitrary",)),
    )(*in_arrays)

    scores = scores_flat[:, :V].reshape(T_, B_, V)
    # with attention omitted and dropout=identity, the decoder output == h[-1]
    output_out = hidden_out[-1]
    return scores, hidden_out, output_out


# ----------------------------- pure-JAX reference ---------------------------
def rnn_decoder_ref(rnn_input, h0, out0, layer_params, wg, bg):
    T_, B_, _ = rnn_input.shape
    L, _, H = h0.shape
    h = h0
    out = out0
    scores = []
    for t in range(T_):
        inp = jnp.concatenate([rnn_input[t], out], axis=1)
        new_h = []
        for l, (wih, whh, bih, bhh) in enumerate(layer_params):
            hp = h[l]
            gi = inp @ wih.T + bih
            gh = hp @ whh.T + bhh
            r = jax.nn.sigmoid(gi[:, :H] + gh[:, :H])
            z = jax.nn.sigmoid(gi[:, H:2 * H] + gh[:, H:2 * H])
            n = jnp.tanh(gi[:, 2 * H:] + r * gh[:, 2 * H:])
            hn = (1.0 - z) * n + z * hp
            new_h.append(hn)
            inp = hn
        h = jnp.stack(new_h)
        out = inp
        logits = out @ wg.T + bg
        scores.append(jax.nn.log_softmax(logits, axis=-1))
    return jnp.stack(scores), h, out


# --------------------------------- main --------------------------------------
if __name__ == "__main__":
    key = jax.random.PRNGKey(0)
    ks = jax.random.split(key, 16)

    # embedding tables (glue)
    word_emb_table = jax.random.normal(ks[0], (VOCAB_WORDS, EMB), jnp.float32) * 0.1
    special_table = jax.random.normal(ks[1], (NUM_SPECIAL + 1, EMB), jnp.float32) * 0.1
    special_table = special_table.at[0].set(0.0)   # padding_idx=0

    # GRUCell parameters (PyTorch layout: W_ih (3H, in), W_hh (3H, H), gates [r,z,n])
    layer_params = []
    kidx = 2
    scale = 1.0 / jnp.sqrt(HID)
    for l in range(LAYERS):
        in_sz = IN_SIZE if l == 0 else HID
        wih = jax.random.uniform(ks[kidx], (3 * HID, in_sz), jnp.float32, -scale, scale); kidx += 1
        whh = jax.random.uniform(ks[kidx], (3 * HID, HID), jnp.float32, -scale, scale); kidx += 1
        bih = jax.random.uniform(ks[kidx], (3 * HID,), jnp.float32, -scale, scale); kidx += 1
        bhh = jax.random.uniform(ks[kidx], (3 * HID,), jnp.float32, -scale, scale); kidx += 1
        layer_params.append((wih, whh, bih, bhh))

    # generator: Linear(HID -> VOCAB_OUT) + log_softmax
    wg = jax.random.uniform(ks[kidx], (VOCAB_OUT, HID), jnp.float32, -scale, scale); kidx += 1
    bg = jax.random.uniform(ks[kidx], (VOCAB_OUT,), jnp.float32, -scale, scale); kidx += 1

    # forward() inputs
    ids = jax.random.randint(ks[kidx], (T, B), 0, VOCAB_WORDS); kidx += 1
    length_countdown = (jnp.arange(T, 0, -1, dtype=jnp.float32)[:, None, None]
                        * jnp.ones((1, B, 1), jnp.float32))           # (T, B, 1)
    h0 = jax.random.normal(ks[kidx], (LAYERS, B, HID), jnp.float32) * 0.1; kidx += 1
    prev_output = jnp.zeros((B, HID), jnp.float32)                    # initial_output()

    # glue: embeddings = word_embeddings(ids) + special_embeddings(special_ids(ids))
    special_ids = jnp.where(ids < NUM_SPECIAL, ids + 1, 0)            # synthetic data.special_ids
    embeddings = jnp.take(word_emb_table, ids, axis=0) + jnp.take(special_table, special_ids, axis=0)
    rnn_input = jnp.concatenate([embeddings, length_countdown], axis=2)  # (T, B, EMB+1)

    scores, hidden_out, output_out = rnn_decoder_pallas(
        rnn_input, h0, prev_output, layer_params, wg, bg)
    jax.block_until_ready((scores, hidden_out, output_out))

    # correctness check against the pure-JAX reference of the PyTorch forward
    scores_r, hidden_r, output_r = rnn_decoder_ref(
        rnn_input, h0, prev_output, layer_params, wg, bg)
    assert scores.shape == (T, B, VOCAB_OUT)
    assert hidden_out.shape == (LAYERS, B, HID)
    assert output_out.shape == (B, HID)
    assert jnp.allclose(scores, scores_r, atol=1e-4, rtol=1e-4)
    assert jnp.allclose(hidden_out, hidden_r, atol=1e-4, rtol=1e-4)
    assert jnp.allclose(output_out, output_r, atol=1e-4, rtol=1e-4)

    print("KERNEL_OK")
</pallas_src>

<mosaic_0001>
module attributes {stable_mosaic.version = 11 : i64} {
  func.func @kernel(%arg0: i32, %arg1: memref<8x4x128xf32, #tpu.memory_space<vmem>>, %arg2: memref<176x128xf32, #tpu.memory_space<vmem>>, %arg3: memref<3x4x32xf32, #tpu.memory_space<vmem>>, %arg4: memref<32x128xf32, #tpu.memory_space<vmem>>, %arg5: memref<2x4x32xf32, #tpu.memory_space<vmem>>, %arg6: memref<32x32xf32, #tpu.memory_space<vmem>>) attributes {dimension_semantics = [#tpu.dimension_semantics<arbitrary>], iteration_bounds = array<i64: 1>, scalar_prefetch = 0 : i64, scratch_operands = 1 : i64, tpu.core_type = #tpu.core_type<tc>, window_params = [{pipeline_mode = #tpu.pipeline_mode<synchronous>, transform_indices = @transform_0, window_bounds = array<i64: 8, 4, 128>}, {pipeline_mode = #tpu.pipeline_mode<synchronous>, transform_indices = @transform_1, window_bounds = array<i64: 176, 128>}, {pipeline_mode = #tpu.pipeline_mode<synchronous>, transform_indices = @transform_2, window_bounds = array<i64: 3, 4, 32>}, {pipeline_mode = #tpu.pipeline_mode<synchronous>, transform_indices = @transform_3, window_bounds = array<i64: 32, 128>}, {pipeline_mode = #tpu.pipeline_mode<synchronous>, transform_indices = @transform_4, window_bounds = array<i64: 2, 4, 32>}]} {
    %c0 = arith.constant 0 : index
    %c0_0 = arith.constant 0 : index
    %0 = vector.load %arg2[%c0, %c0_0] : memref<176x128xf32, #tpu.memory_space<vmem>>, vector<64x128xf32>
    %c64 = arith.constant 64 : index
    %c0_1 = arith.constant 0 : index
    %1 = vector.load %arg2[%c64, %c0_1] : memref<176x128xf32, #tpu.memory_space<vmem>>, vector<64x128xf32>
    %c128 = arith.constant 128 : index
    %c0_2 = arith.constant 0 : index
    %2 = vector.load %arg2[%c128, %c0_2] : memref<176x128xf32, #tpu.memory_space<vmem>>, vector<1x128xf32>
    %c136 = arith.constant 136 : index
    %c0_3 = arith.constant 0 : index
    %3 = vector.load %arg2[%c136, %c0_3] : memref<176x128xf32, #tpu.memory_space<vmem>>, vector<32x128xf32>
    %c168 = arith.constant 168 : index
    %c0_4 = arith.constant 0 : index
    %4 = vector.load %arg2[%c168, %c0_4] : memref<176x128xf32, #tpu.memory_space<vmem>>, vector<1x128xf32>
    %c0_5 = arith.constant 0 : index
    %c0_6 = arith.constant 0 : index
    %c0_7 = arith.constant 0 : index
    %5 = vector.load %arg3[%c0_5, %c0_6, %c0_7] : memref<3x4x32xf32, #tpu.memory_space<vmem>>, vector<1x4x32xf32>
    %6 = vector.shape_cast %5 : vector<1x4x32xf32> to vector<4x32xf32>
    %c1 = arith.constant 1 : index
    %c0_8 = arith.constant 0 : index
    %c0_9 = arith.constant 0 : index
    %7 = vector.load %arg3[%c1, %c0_8, %c0_9] : memref<3x4x32xf32, #tpu.memory_space<vmem>>, vector<1x4x32xf32>
    %8 = vector.shape_cast %7 : vector<1x4x32xf32> to vector<4x32xf32>
    %c2 = arith.constant 2 : index
    %c0_10 = arith.constant 0 : index
    %c0_11 = arith.constant 0 : index
    %9 = vector.load %arg3[%c2, %c0_10, %c0_11] : memref<3x4x32xf32, #tpu.memory_space<vmem>>, vector<1x4x32xf32>
    %10 = vector.shape_cast %9 : vector<1x4x32xf32> to vector<4x32xf32>
    %11 = tpu.concatenate %10, %6 in 1 : vector<4x32xf32>, vector<4x32xf32> -> vector<4x64xf32>
    %c0_12 = arith.constant 0 : index
    %c0_13 = arith.constant 0 : index
    %c0_14 = arith.constant 0 : index
    %12 = vector.load %arg1[%c0_12, %c0_13, %c0_14] : memref<8x4x128xf32, #tpu.memory_space<vmem>>, vector<1x4x128xf32>
    %13 = vector.shape_cast %12 : vector<1x4x128xf32> to vector<4x128xf32>
    %cst = arith.constant dense<0.000000e+00> : vector<4x128xf32>
    %14 = tpu.matmul %11, %0, %cst {dimension_numbers = #tpu.dot_dimension_numbers<[1], [0], [0], [1], [0, 0, 1, 1], [], []>} : vector<4x64xf32>, vector<64x128xf32>, vector<4x128xf32> -> vector<4x128xf32>
    %15 = arith.addf %13, %14 : vector<4x128xf32>
    %16 = vector.extract_strided_slice %15 {offsets = [0, 0], sizes = [4, 32], strides = [1, 1]} : vector<4x128xf32> to vector<4x32xf32>
    %17 = arith.negf %16 : vector<4x32xf32>
    %18 = math.exp %17 : vector<4x32xf32>
    %cst_15 = arith.constant 1.000000e+00 : f32
    %19 = vector.broadcast %cst_15 : f32 to vector<4x32xf32>
    %20 = arith.addf %19, %18 : vector<4x32xf32>
    %21 = arith.divf %19, %20 : vector<4x32xf32>
    %22 = vector.extract_strided_slice %15 {offsets = [0, 32], sizes = [4, 32], strides = [1, 1]} : vector<4x128xf32> to vector<4x32xf32>
    %23 = arith.negf %22 : vector<4x32xf32>
    %24 = math.exp %23 : vector<4x32xf32>
    %cst_16 = arith.constant 1.000000e+00 : f32
    %25 = vector.broadcast %cst_16 : f32 to vector<4x32xf32>
    %26 = arith.addf %25, %24 : vector<4x32xf32>
    %27 = arith.divf %25, %26 : vector<4x32xf32>
    %28 = vector.extract_strided_slice %15 {offsets = [0, 64], sizes = [4, 32], strides = [1, 1]} : vector<4x128xf32> to vector<4x32xf32>
    %29 = vector.extract_strided_slice %15 {offsets = [0, 96], sizes = [4, 32], strides = [1, 1]} : vector<4x128xf32> to vector<4x32xf32>
    %30 = arith.mulf %21, %29 : vector<4x32xf32>
    %31 = arith.addf %28, %30 : vector<4x32xf32>
    %32 = math.tanh %31 : vector<4x32xf32>
    %cst_17 = arith.constant 1.000000e+00 : f32
    %33 = vector.broadcast %cst_17 : f32 to vector<4x32xf32>
    %34 = arith.subf %33, %27 : vector<4x32xf32>
    %35 = arith.mulf %34, %32 : vector<4x32xf32>
    %36 = arith.mulf %27, %6 : vector<4x32xf32>
    %37 = arith.addf %35, %36 : vector<4x32xf32>
    %38 = tpu.concatenate %37, %8 in 1 : vector<4x32xf32>, vector<4x32xf32> -> vector<4x64xf32>
    %cst_18 = arith.constant dense<0.000000e+00> : vector<4x128xf32>
    %39 = tpu.matmul %38, %1, %cst_18 {dimension_numbers = #tpu.dot_dimension_numbers<[1], [0], [0], [1], [0, 0, 1, 1], [], []>} : vector<4x64xf32>, vector<64x128xf32>, vector<4x128xf32> -> vector<4x128xf32>
    %40 = vector.broadcast %2 : vector<1x128xf32> to vector<4x128xf32>
    %41 = arith.addf %40, %39 : vector<4x128xf32>
    %42 = vector.extract_strided_slice %41 {offsets = [0, 0], sizes = [4, 32], strides = [1, 1]} : vector<4x128xf32> to vector<4x32xf32>
    %43 = arith.negf %42 : vector<4x32xf32>
    %44 = math.exp %43 : vector<4x32xf32>
    %cst_19 = arith.constant 1.000000e+00 : f32
    %45 = vector.broadcast %cst_19 : f32 to vector<4x32xf32>
    %46 = arith.addf %45, %44 : vector<4x32xf32>
    %47 = arith.divf %45, %46 : vector<4x32xf32>
    %48 = vector.extract_strided_slice %41 {offsets = [0, 32], sizes = [4, 32], strides = [1, 1]} : vector<4x128xf32> to vector<4x32xf32>
    %49 = arith.negf %48 : vector<4x32xf32>
    %50 = math.exp %49 : vector<4x32xf32>
    %cst_20 = arith.constant 1.000000e+00 : f32
    %51 = vector.broadcast %cst_20 : f32 to vector<4x32xf32>
    %52 = arith.addf %51, %50 : vector<4x32xf32>
    %53 = arith.divf %51, %52 : vector<4x32xf32>
    %54 = vector.extract_strided_slice %41 {offsets = [0, 64], sizes = [4, 32], strides = [1, 1]} : vector<4x128xf32> to vector<4x32xf32>
    %55 = vector.extract_strided_slice %41 {offsets = [0, 96], sizes = [4, 32], strides = [1, 1]} : vector<4x128xf32> to vector<4x32xf32>
    %56 = arith.mulf %47, %55 : vector<4x32xf32>
    %57 = arith.addf %54, %56 : vector<4x32xf32>
    %58 = math.tanh %57 : vector<4x32xf32>
    %cst_21 = arith.constant 1.000000e+00 : f32
    %59 = vector.broadcast %cst_21 : f32 to vector<4x32xf32>
    %60 = arith.subf %59, %53 : vector<4x32xf32>
    %61 = arith.mulf %60, %58 : vector<4x32xf32>
    %62 = arith.mulf %53, %8 : vector<4x32xf32>
    %63 = arith.addf %61, %62 : vector<4x32xf32>
    %c0_22 = arith.constant 0 : index
    %c0_23 = arith.constant 0 : index
    %64 = vector.load %arg6[%c0_22, %c0_23] : memref<32x32xf32, #tpu.memory_space<vmem>>, vector<4x32xf32>
    tpu.vector_store %arg6[%c0_22, %c0_23], %63 {strides = array<i32>} : memref<32x32xf32, #tpu.memory_space<vmem>>, vector<4x32xf32>,
    %65 = tpu.concatenate %63, %37 in 1 : vector<4x32xf32>, vector<4x32xf32> -> vector<4x64xf32>
    %c1_24 = arith.constant 1 : index
    %c0_25 = arith.constant 0 : index
    %c0_26 = arith.constant 0 : index
    %66 = vector.load %arg1[%c1_24, %c0_25, %c0_26] : memref<8x4x128xf32, #tpu.memory_space<vmem>>, vector<1x4x128xf32>
    %67 = vector.shape_cast %66 : vector<1x4x128xf32> to vector<4x128xf32>
    %cst_27 = arith.constant dense<0.000000e+00> : vector<4x128xf32>
    %68 = tpu.matmul %65, %0, %cst_27 {dimension_numbers = #tpu.dot_dimension_numbers<[1], [0], [0], [1], [0, 0, 1, 1], [], []>} : vector<4x64xf32>, vector<64x128xf32>, vector<4x128xf32> -> vector<4x128xf32>
    %69 = arith.addf %67, %68 : vector<4x128xf32>
    %70 = vector.extract_strided_slice %69 {offsets = [0, 0], sizes = [4, 32], strides = [1, 1]} : vector<4x128xf32> to vector<4x32xf32>
    %71 = arith.negf %70 : vector<4x32xf32>
    %72 = math.exp %71 : vector<4x32xf32>
    %cst_28 = arith.constant 1.000000e+00 : f32
    %73 = vector.broadcast %cst_28 : f32 to vector<4x32xf32>
    %74 = arith.addf %73, %72 : vector<4x32xf32>
    %75 = arith.divf %73, %74 : vector<4x32xf32>
    %76 = vector.extract_strided_slice %69 {offsets = [0, 32], sizes = [4, 32], strides = [1, 1]} : vector<4x128xf32> to vector<4x32xf32>
    %77 = arith.negf %76 : vector<4x32xf32>
    %78 = math.exp %77 : vector<4x32xf32>
    %cst_29 = arith.constant 1.000000e+00 : f32
    %79 = vector.broadcast %cst_29 : f32 to vector<4x32xf32>
    %80 = arith.addf %79, %78 : vector<4x32xf32>
    %81 = arith.divf %79, %80 : vector<4x32xf32>
    %82 = vector.extract_strided_slice %69 {offsets = [0, 64], sizes = [4, 32], strides = [1, 1]} : vector<4x128xf32> to vector<4x32xf32>
    %83 = vector.extract_strided_slice %69 {offsets = [0, 96], sizes = [4, 32], strides = [1, 1]} : vector<4x128xf32> to vector<4x32xf32>
    %84 = arith.mulf %75, %83 : vector<4x32xf32>
    %85 = arith.addf %82, %84 : vector<4x32xf32>
    %86 = math.tanh %85 : vector<4x32xf32>
    %cst_30 = arith.constant 1.000000e+00 : f32
    %87 = vector.broadcast %cst_30 : f32 to vector<4x32xf32>
    %88 = arith.subf %87, %81 : vector<4x32xf32>
    %89 = arith.mulf %88, %86 : vector<4x32xf32>
    %90 = arith.mulf %81, %37 : vector<4x32xf32>
    %91 = arith.addf %89, %90 : vector<4x32xf32>
    %92 = tpu.concatenate %91, %63 in 1 : vector<4x32xf32>, vector<4x32xf32> -> vector<4x64xf32>
    %cst_31 = arith.constant dense<0.000000e+00> : vector<4x128xf32>
    %93 = tpu.matmul %92, %1, %cst_31 {dimension_numbers = #tpu.dot_dimension_numbers<[1], [0], [0], [1], [0, 0, 1, 1], [], []>} : vector<4x64xf32>, vector<64x128xf32>, vector<4x128xf32> -> vector<4x128xf32>
    %94 = vector.broadcast %2 : vector<1x128xf32> to vector<4x128xf32>
    %95 = arith.addf %94, %93 : vector<4x128xf32>
    %96 = vector.extract_strided_slice %95 {offsets = [0, 0], sizes = [4, 32], strides = [1, 1]} : vector<4x128xf32> to vector<4x32xf32>
    %97 = arith.negf %96 : vector<4x32xf32>
    %98 = math.exp %97 : vector<4x32xf32>
    %cst_32 = arith.constant 1.000000e+00 : f32
    %99 = vector.broadcast %cst_32 : f32 to vector<4x32xf32>
    %100 = arith.addf %99, %98 : vector<4x32xf32>
    %101 = arith.divf %99, %100 : vector<4x32xf32>
    %102 = vector.extract_strided_slice %95 {offsets = [0, 32], sizes = [4, 32], strides = [1, 1]} : vector<4x128xf32> to vector<4x32xf32>
    %103 = arith.negf %102 : vector<4x32xf32>
    %104 = math.exp %103 : vector<4x32xf32>
    %cst_33 = arith.constant 1.000000e+00 : f32
    %105 = vector.broadcast %cst_33 : f32 to vector<4x32xf32>
    %106 = arith.addf %105, %104 : vector<4x32xf32>
    %107 = arith.divf %105, %106 : vector<4x32xf32>
    %108 = vector.extract_strided_slice %95 {offsets = [0, 64], sizes = [4, 32], strides = [1, 1]} : vector<4x128xf32> to vector<4x32xf32>
    %109 = vector.extract_strided_slice %95 {offsets = [0, 96], sizes = [4, 32], strides = [1, 1]} : vector<4x128xf32> to vector<4x32xf32>
    %110 = arith.mulf %101, %109 : vector<4x32xf32>
    %111 = arith.addf %108, %110 : vector<4x32xf32>
    %112 = math.tanh %111 : vector<4x32xf32>
    %cst_34 = arith.constant 1.000000e+00 : f32
    %113 = vector.broadcast %cst_34 : f32 to vector<4x32xf32>
    %114 = arith.subf %113, %107 : vector<4x32xf32>
    %115 = arith.mulf %114, %112 : vector<4x32xf32>
    %116 = arith.mulf %107, %63 : vector<4x32xf32>
    %117 = arith.addf %115, %116 : vector<4x32xf32>
    %c4 = arith.constant 4 : index
    %c0_35 = arith.constant 0 : index
    %118 = vector.load %arg6[%c4, %c0_35] : memref<32x32xf32, #tpu.memory_space<vmem>>, vector<4x32xf32>
    tpu.vector_store %arg6[%c4, %c0_35], %117 {strides = array<i32>} : memref<32x32xf32, #tpu.memory_space<vmem>>, vector<4x32xf32>,
    %119 = tpu.concatenate %117, %91 in 1 : vector<4x32xf32>, vector<4x32xf32> -> vector<4x64xf32>
    %c2_36 = arith.constant 2 : index
    %c0_37 = arith.constant 0 : index
    %c0_38 = arith.constant 0 : index
    %120 = vector.load %arg1[%c2_36, %c0_37, %c0_38] : memref<8x4x128xf32, #tpu.memory_space<vmem>>, vector<1x4x128xf32>
    %121 = vector.shape_cast %120 : vector<1x4x128xf32> to vector<4x128xf32>
    %cst_39 = arith.constant dense<0.000000e+00> : vector<4x128xf32>
    %122 = tpu.matmul %119, %0, %cst_39 {dimension_numbers = #tpu.dot_dimension_numbers<[1], [0], [0], [1], [0, 0, 1, 1], [], []>} : vector<4x64xf32>, vector<64x128xf32>, vector<4x128xf32> -> vector<4x128xf32>
    %123 = arith.addf %121, %122 : vector<4x128xf32>
    %124 = vector.extract_strided_slice %123 {offsets = [0, 0], sizes = [4, 32], strides = [1, 1]} : vector<4x128xf32> to vector<4x32xf32>
    %125 = arith.negf %124 : vector<4x32xf32>
    %126 = math.exp %125 : vector<4x32xf32>
    %cst_40 = arith.constant 1.000000e+00 : f32
    %127 = vector.broadcast %cst_40 : f32 to vector<4x32xf32>
    %128 = arith.addf %127, %126 : vector<4x32xf32>
    %129 = arith.divf %127, %128 : vector<4x32xf32>
    %130 = vector.extract_strided_slice %123 {offsets = [0, 32], sizes = [4, 32], strides = [1, 1]} : vector<4x128xf32> to vector<4x32xf32>
    %131 = arith.negf %130 : vector<4x32xf32>
    %132 = math.exp %131 : vector<4x32xf32>
    %cst_41 = arith.constant 1.000000e+00 : f32
    %133 = vector.broadcast %cst_41 : f32 to vector<4x32xf32>
    %134 = arith.addf %133, %132 : vector<4x32xf32>
    %135 = arith.divf %133, %134 : vector<4x32xf32>
    %136 = vector.extract_strided_slice %123 {offsets = [0, 64], sizes = [4, 32], strides = [1, 1]} : vector<4x128xf32> to vector<4x32xf32>
    %137 = vector.extract_strided_slice %123 {offsets = [0, 96], sizes = [4, 32], strides = [1, 1]} : vector<4x128xf32> to vector<4x32xf32>
    %138 = arith.mulf %129, %137 : vector<4x32xf32>
    %139 = arith.addf %136, %138 : vector<4x32xf32>
    %140 = math.tanh %139 : vector<4x32xf32>
    %cst_42 = arith.constant 1.000000e+00 : f32
    %141 = vector.broadcast %cst_42 : f32 to vector<4x32xf32>
    %142 = arith.subf %141, %135 : vector<4x32xf32>
    %143 = arith.mulf %142, %140 : vector<4x32xf32>
    %144 = arith.mulf %135, %91 : vector<4x32xf32>
    %145 = arith.addf %143, %144 : vector<4x32xf32>
    %146 = tpu.concatenate %145, %117 in 1 : vector<4x32xf32>, vector<4x32xf32> -> vector<4x64xf32>
    %cst_43 = arith.constant dense<0.000000e+00> : vector<4x128xf32>
    %147 = tpu.matmul %146, %1, %cst_43 {dimension_numbers = #tpu.dot_dimension_numbers<[1], [0], [0], [1], [0, 0, 1, 1], [], []>} : vector<4x64xf32>, vector<64x128xf32>, vector<4x128xf32> -> vector<4x128xf32>
    %148 = vector.broadcast %2 : vector<1x128xf32> to vector<4x128xf32>
    %149 = arith.addf %148, %147 : vector<4x128xf32>
    %150 = vector.extract_strided_slice %149 {offsets = [0, 0], sizes = [4, 32], strides = [1, 1]} : vector<4x128xf32> to vector<4x32xf32>
    %151 = arith.negf %150 : vector<4x32xf32>
    %152 = math.exp %151 : vector<4x32xf32>
    %cst_44 = arith.constant 1.000000e+00 : f32
    %153 = vector.broadcast %cst_44 : f32 to vector<4x32xf32>
    %154 = arith.addf %153, %152 : vector<4x32xf32>
    %155 = arith.divf %153, %154 : vector<4x32xf32>
    %156 = vector.extract_strided_slice %149 {offsets = [0, 32], sizes = [4, 32], strides = [1, 1]} : vector<4x128xf32> to vector<4x32xf32>
    %157 = arith.negf %156 : vector<4x32xf32>
    %158 = math.exp %157 : vector<4x32xf32>
    %cst_45 = arith.constant 1.000000e+00 : f32
    %159 = vector.broadcast %cst_45 : f32 to vector<4x32xf32>
    %160 = arith.addf %159, %158 : vector<4x32xf32>
    %161 = arith.divf %159, %160 : vector<4x32xf32>
    %162 = vector.extract_strided_slice %149 {offsets = [0, 64], sizes = [4, 32], strides = [1, 1]} : vector<4x128xf32> to vector<4x32xf32>
    %163 = vector.extract_strided_slice %149 {offsets = [0, 96], sizes = [4, 32], strides = [1, 1]} : vector<4x128xf32> to vector<4x32xf32>
    %164 = arith.mulf %155, %163 : vector<4x32xf32>
    %165 = arith.addf %162, %164 : vector<4x32xf32>
    %166 = math.tanh %165 : vector<4x32xf32>
    %cst_46 = arith.constant 1.000000e+00 : f32
    %167 = vector.broadcast %cst_46 : f32 to vector<4x32xf32>
    %168 = arith.subf %167, %161 : vector<4x32xf32>
    %169 = arith.mulf %168, %166 : vector<4x32xf32>
    %170 = arith.mulf %161, %117 : vector<4x32xf32>
    %171 = arith.addf %169, %170 : vector<4x32xf32>
    %c8 = arith.constant 8 : index
    %c0_47 = arith.constant 0 : index
    %172 = vector.load %arg6[%c8, %c0_47] : memref<32x32xf32, #tpu.memory_space<vmem>>, vector<4x32xf32>
    tpu.vector_store %arg6[%c8, %c0_47], %171 {strides = array<i32>} : memref<32x32xf32, #tpu.memory_space<vmem>>, vector<4x32xf32>,
    %173 = tpu.concatenate %171, %145 in 1 : vector<4x32xf32>, vector<4x32xf32> -> vector<4x64xf32>
    %c3 = arith.constant 3 : index
    %c0_48 = arith.constant 0 : index
    %c0_49 = arith.constant 0 : index
    %174 = vector.load %arg1[%c3, %c0_48, %c0_49] : memref<8x4x128xf32, #tpu.memory_space<vmem>>, vector<1x4x128xf32>
    %175 = vector.shape_cast %174 : vector<1x4x128xf32> to vector<4x128xf32>
    %cst_50 = arith.constant dense<0.000000e+00> : vector<4x128xf32>
    %176 = tpu.matmul %173, %0, %cst_50 {dimension_numbers = #tpu.dot_dimension_numbers<[1], [0], [0], [1], [0, 0, 1, 1], [], []>} : vector<4x64xf32>, vector<64x128xf32>, vector<4x128xf32> -> vector<4x128xf32>
    %177 = arith.addf %175, %176 : vector<4x128xf32>
    %178 = vector.extract_strided_slice %177 {offsets = [0, 0], sizes = [4, 32], strides = [1, 1]} : vector<4x128xf32> to vector<4x32xf32>
    %179 = arith.negf %178 : vector<4x32xf32>
    %180 = math.exp %179 : vector<4x32xf32>
    %cst_51 = arith.constant 1.000000e+00 : f32
    %181 = vector.broadcast %cst_51 : f32 to vector<4x32xf32>
    %182 = arith.addf %181, %180 : vector<4x32xf32>
    %183 = arith.divf %181, %182 : vector<4x32xf32>
    %184 = vector.extract_strided_slice %177 {offsets = [0, 32], sizes = [4, 32], strides = [1, 1]} : vector<4x128xf32> to vector<4x32xf32>
    %185 = arith.negf %184 : vector<4x32xf32>
    %186 = math.exp %185 : vector<4x32xf32>
    %cst_52 = arith.constant 1.000000e+00 : f32
    %187 = vector.broadcast %cst_52 : f32 to vector<4x32xf32>
    %188 = arith.addf %187, %186 : vector<4x32xf32>
    %189 = arith.divf %187, %188 : vector<4x32xf32>
    %190 = vector.extract_strided_slice %177 {offsets = [0, 64], sizes = [4, 32], strides = [1, 1]} : vector<4x128xf32> to vector<4x32xf32>
    %191 = vector.extract_strided_slice %177 {offsets = [0, 96], sizes = [4, 32], strides = [1, 1]} : vector<4x128xf32> to vector<4x32xf32>
    %192 = arith.mulf %183, %191 : vector<4x32xf32>
    %193 = arith.addf %190, %192 : vector<4x32xf32>
    %194 = math.tanh %193 : vector<4x32xf32>
    %cst_53 = arith.constant 1.000000e+00 : f32
    %195 = vector.broadcast %cst_53 : f32 to vector<4x32xf32>
    %196 = arith.subf %195, %189 : vector<4x32xf32>
    %197 = arith.mulf %196, %194 : vector<4x32xf32>
    %198 = arith.mulf %189, %145 : vector<4x32xf32>
    %199 = arith.addf %197, %198 : vector<4x32xf32>
    %200 = tpu.concatenate %199, %171 in 1 : vector<4x32xf32>, vector<4x32xf32> -> vector<4x64xf32>
    %cst_54 = arith.constant dense<0.000000e+00> : vector<4x128xf32>
    %201 = tpu.matmul %200, %1, %cst_54 {dimension_numbers = #tpu.dot_dimension_numbers<[1], [0], [0], [1], [0, 0, 1, 1], [], []>} : vector<4x64xf32>, vector<64x128xf32>, vector<4x128xf32> -> vector<4x128xf32>
    %202 = vector.broadcast %2 : vector<1x128xf32> to vector<4x128xf32>
    %203 = arith.addf %202, %201 : vector<4x128xf32>
    %204 = vector.extract_strided_slice %203 {offsets = [0, 0], sizes = [4, 32], strides = [1, 1]} : vector<4x128xf32> to vector<4x32xf32>
    %205 = arith.negf %204 : vector<4x32xf32>
    %206 = math.exp %205 : vector<4x32xf32>
    %cst_55 = arith.constant 1.000000e+00 : f32
    %207 = vector.broadcast %cst_55 : f32 to vector<4x32xf32>
    %208 = arith.addf %207, %206 : vector<4x32xf32>
    %209 = arith.divf %207, %208 : vector<4x32xf32>
    %210 = vector.extract_strided_slice %203 {offsets = [0, 32], sizes = [4, 32], strides = [1, 1]} : vector<4x128xf32> to vector<4x32xf32>
    %211 = arith.negf %210 : vector<4x32xf32>
    %212 = math.exp %211 : vector<4x32xf32>
    %cst_56 = arith.constant 1.000000e+00 : f32
    %213 = vector.broadcast %cst_56 : f32 to vector<4x32xf32>
    %214 = arith.addf %213, %212 : vector<4x32xf32>
    %215 = arith.divf %213, %214 : vector<4x32xf32>
    %216 = vector.extract_strided_slice %203 {offsets = [0, 64], sizes = [4, 32], strides = [1, 1]} : vector<4x128xf32> to vector<4x32xf32>
    %217 = vector.extract_strided_slice %203 {offsets = [0, 96], sizes = [4, 32], strides = [1, 1]} : vector<4x128xf32> to vector<4x32xf32>
    %218 = arith.mulf %209, %217 : vector<4x32xf32>
    %219 = arith.addf %216, %218 : vector<4x32xf32>
    %220 = math.tanh %219 : vector<4x32xf32>
    %cst_57 = arith.constant 1.000000e+00 : f32
    %221 = vector.broadcast %cst_57 : f32 to vector<4x32xf32>
    %222 = arith.subf %221, %215 : vector<4x32xf32>
    %223 = arith.mulf %222, %220 : vector<4x32xf32>
    %224 = arith.mulf %215, %171 : vector<4x32xf32>
    %225 = arith.addf %223, %224 : vector<4x32xf32>
    %c12 = arith.constant 12 : index
    %c0_58 = arith.constant 0 : index
    %226 = vector.load %arg6[%c12, %c0_58] : memref<32x32xf32, #tpu.memory_space<vmem>>, vector<4x32xf32>
    tpu.vector_store %arg6[%c12, %c0_58], %225 {strides = array<i32>} : memref<32x32xf32, #tpu.memory_space<vmem>>, vector<4x32xf32>,
    %227 = tpu.concatenate %225, %199 in 1 : vector<4x32xf32>, vector<4x32xf32> -> vector<4x64xf32>
    %c4_59 = arith.constant 4 : index
    %c0_60 = arith.constant 0 : index
    %c0_61 = arith.constant 0 : index
    %228 = vector.load %arg1[%c4_59, %c0_60, %c0_61] : memref<8x4x128xf32, #tpu.memory_space<vmem>>, vector<1x4x128xf32>
    %229 = vector.shape_cast %228 : vector<1x4x128xf32> to vector<4x128xf32>
    %cst_62 = arith.constant dense<0.000000e+00> : vector<4x128xf32>
    %230 = tpu.matmul %227, %0, %cst_62 {dimension_numbers = #tpu.dot_dimension_numbers<[1], [0], [0], [1], [0, 0, 1, 1], [], []>} : vector<4x64xf32>, vector<64x128xf32>, vector<4x128xf32> -> vector<4x128xf32>
    %231 = arith.addf %229, %230 : vector<4x128xf32>
    %232 = vector.extract_strided_slice %231 {offsets = [0, 0], sizes = [4, 32], strides = [1, 1]} : vector<4x128xf32> to vector<4x32xf32>
    %233 = arith.negf %232 : vector<4x32xf32>
    %234 = math.exp %233 : vector<4x32xf32>
    %cst_63 = arith.constant 1.000000e+00 : f32
    %235 = vector.broadcast %cst_63 : f32 to vector<4x32xf32>
    %236 = arith.addf %235, %234 : vector<4x32xf32>
    %237 = arith.divf %235, %236 : vector<4x32xf32>
    %238 = vector.extract_strided_slice %231 {offsets = [0, 32], sizes = [4, 32], strides = [1, 1]} : vector<4x128xf32> to vector<4x32xf32>
    %239 = arith.negf %238 : vector<4x32xf32>
    %240 = math.exp %239 : vector<4x32xf32>
    %cst_64 = arith.constant 1.000000e+00 : f32
    %241 = vector.broadcast %cst_64 : f32 to vector<4x32xf32>
    %242 = arith.addf %241, %240 : vector<4x32xf32>
    %243 = arith.divf %241, %242 : vector<4x32xf32>
    %244 = vector.extract_strided_slice %231 {offsets = [0, 64], sizes = [4, 32], strides = [1, 1]} : vector<4x128xf32> to vector<4x32xf32>
    %245 = vector.extract_strided_slice %231 {offsets = [0, 96], sizes = [4, 32], strides = [1, 1]} : vector<4x128xf32> to vector<4x32xf32>
    %246 = arith.mulf %237, %245 : vector<4x32xf32>
    %247 = arith.addf %244, %246 : vector<4x32xf32>
    %248 = math.tanh %247 : vector<4x32xf32>
    %cst_65 = arith.constant 1.000000e+00 : f32
    %249 = vector.broadcast %cst_65 : f32 to vector<4x32xf32>
    %250 = arith.subf %249, %243 : vector<4x32xf32>
    %251 = arith.mulf %250, %248 : vector<4x32xf32>
    %252 = arith.mulf %243, %199 : vector<4x32xf32>
    %253 = arith.addf %251, %252 : vector<4x32xf32>
    %254 = tpu.concatenate %253, %225 in 1 : vector<4x32xf32>, vector<4x32xf32> -> vector<4x64xf32>
    %cst_66 = arith.constant dense<0.000000e+00> : vector<4x128xf32>
    %255 = tpu.matmul %254, %1, %cst_66 {dimension_numbers = #tpu.dot_dimension_numbers<[1], [0], [0], [1], [0, 0, 1, 1], [], []>} : vector<4x64xf32>, vector<64x128xf32>, vector<4x128xf32> -> vector<4x128xf32>
    %256 = vector.broadcast %2 : vector<1x128xf32> to vector<4x128xf32>
    %257 = arith.addf %256, %255 : vector<4x128xf32>
    %258 = vector.extract_strided_slice %257 {offsets = [0, 0], sizes = [4, 32], strides = [1, 1]} : vector<4x128xf32> to vector<4x32xf32>
    %259 = arith.negf %258 : vector<4x32xf32>
    %260 = math.exp %259 : vector<4x32xf32>
    %cst_67 = arith.constant 1.000000e+00 : f32
    %261 = vector.broadcast %cst_67 : f32 to vector<4x32xf32>
    %262 = arith.addf %261, %260 : vector<4x32xf32>
    %263 = arith.divf %261, %262 : vector<4x32xf32>
    %264 = vector.extract_strided_slice %257 {offsets = [0, 32], sizes = [4, 32], strides = [1, 1]} : vector<4x128xf32> to vector<4x32xf32>
    %265 = arith.negf %264 : vector<4x32xf32>
    %266 = math.exp %265 : vector<4x32xf32>
    %cst_68 = arith.constant 1.000000e+00 : f32
    %267 = vector.broadcast %cst_68 : f32 to vector<4x32xf32>
    %268 = arith.addf %267, %266 : vector<4x32xf32>
    %269 = arith.divf %267, %268 : vector<4x32xf32>
    %270 = vector.extract_strided_slice %257 {offsets = [0, 64], sizes = [4, 32], strides = [1, 1]} : vector<4x128xf32> to vector<4x32xf32>
    %271 = vector.extract_strided_slice %257 {offsets = [0, 96], sizes = [4, 32], strides = [1, 1]} : vector<4x128xf32> to vector<4x32xf32>
    %272 = arith.mulf %263, %271 : vector<4x32xf32>
    %273 = arith.addf %270, %272 : vector<4x32xf32>
    %274 = math.tanh %273 : vector<4x32xf32>
    %cst_69 = arith.constant 1.000000e+00 : f32
    %275 = vector.broadcast %cst_69 : f32 to vector<4x32xf32>
    %276 = arith.subf %275, %269 : vector<4x32xf32>
    %277 = arith.mulf %276, %274 : vector<4x32xf32>
    %278 = arith.mulf %269, %225 : vector<4x32xf32>
    %279 = arith.addf %277, %278 : vector<4x32xf32>
    %c16 = arith.constant 16 : index
    %c0_70 = arith.constant 0 : index
    %280 = vector.load %arg6[%c16, %c0_70] : memref<32x32xf32, #tpu.memory_space<vmem>>, vector<4x32xf32>
    tpu.vector_store %arg6[%c16, %c0_70], %279 {strides = array<i32>} : memref<32x32xf32, #tpu.memory_space<vmem>>, vector<4x32xf32>,
    %281 = tpu.concatenate %279, %253 in 1 : vector<4x32xf32>, vector<4x32xf32> -> vector<4x64xf32>
    %c5 = arith.constant 5 : index
    %c0_71 = arith.constant 0 : index
    %c0_72 = arith.constant 0 : index
    %282 = vector.load %arg1[%c5, %c0_71, %c0_72] : memref<8x4x128xf32, #tpu.memory_space<vmem>>, vector<1x4x128xf32>
    %283 = vector.shape_cast %282 : vector<1x4x128xf32> to vector<4x128xf32>
    %cst_73 = arith.constant dense<0.000000e+00> : vector<4x128xf32>
    %284 = tpu.matmul %281, %0, %cst_73 {dimension_numbers = #tpu.dot_dimension_numbers<[1], [0], [0], [1], [0, 0, 1, 1], [], []>} : vector<4x64xf32>, vector<64x128xf32>, vector<4x128xf32> -> vector<4x128xf32>
    %285 = arith.addf %283, %284 : vector<4x128xf32>
    %286 = vector.extract_strided_slice %285 {offsets = [0, 0], sizes = [4, 32], strides = [1, 1]} : vector<4x128xf32> to vector<4x32xf32>
    %287 = arith.negf %286 : vector<4x32xf32>
    %288 = math.exp %287 : vector<4x32xf32>
    %cst_74 = arith.constant 1.000000e+00 : f32
    %289 = vector.broadcast %cst_74 : f32 to vector<4x32xf32>
    %290 = arith.addf %289, %288 : vector<4x32xf32>
    %291 = arith.divf %289, %290 : vector<4x32xf32>
    %292 = vector.extract_strided_slice %285 {offsets = [0, 32], sizes = [4, 32], strides = [1, 1]} : vector<4x128xf32> to vector<4x32xf32>
    %293 = arith.negf %292 : vector<4x32xf32>
    %294 = math.exp %293 : vector<4x32xf32>
    %cst_75 = arith.constant 1.000000e+00 : f32
    %295 = vector.broadcast %cst_75 : f32 to vector<4x32xf32>
    %296 = arith.addf %295, %294 : vector<4x32xf32>
    %297 = arith.divf %295, %296 : vector<4x32xf32>
    %298 = vector.extract_strided_slice %285 {offsets = [0, 64], sizes = [4, 32], strides = [1, 1]} : vector<4x128xf32> to vector<4x32xf32>
    %299 = vector.extract_strided_slice %285 {offsets = [0, 96], sizes = [4, 32], strides = [1, 1]} : vector<4x128xf32> to vector<4x32xf32>
    %300 = arith.mulf %291, %299 : vector<4x32xf32>
    %301 = arith.addf %298, %300 : vector<4x32xf32>
    %302 = math.tanh %301 : vector<4x32xf32>
    %cst_76 = arith.constant 1.000000e+00 : f32
    %303 = vector.broadcast %cst_76 : f32 to vector<4x32xf32>
    %304 = arith.subf %303, %297 : vector<4x32xf32>
    %305 = arith.mulf %304, %302 : vector<4x32xf32>
    %306 = arith.mulf %297, %253 : vector<4x32xf32>
    %307 = arith.addf %305, %306 : vector<4x32xf32>
    %308 = tpu.concatenate %307, %279 in 1 : vector<4x32xf32>, vector<4x32xf32> -> vector<4x64xf32>
    %cst_77 = arith.constant dense<0.000000e+00> : vector<4x128xf32>
    %309 = tpu.matmul %308, %1, %cst_77 {dimension_numbers = #tpu.dot_dimension_numbers<[1], [0], [0], [1], [0, 0, 1, 1], [], []>} : vector<4x64xf32>, vector<64x128xf32>, vector<4x128xf32> -> vector<4x128xf32>
    %310 = vector.broadcast %2 : vector<1x128xf32> to vector<4x128xf32>
    %311 = arith.addf %310, %309 : vector<4x128xf32>
    %312 = vector.extract_strided_slice %311 {offsets = [0, 0], sizes = [4, 32], strides = [1, 1]} : vector<4x128xf32> to vector<4x32xf32>
    %313 = arith.negf %312 : vector<4x32xf32>
    %314 = math.exp %313 : vector<4x32xf32>
    %cst_78 = arith.constant 1.000000e+00 : f32
    %315 = vector.broadcast %cst_78 : f32 to vector<4x32xf32>
    %316 = arith.addf %315, %314 : vector<4x32xf32>
    %317 = arith.divf %315, %316 : vector<4x32xf32>
    %318 = vector.extract_strided_slice %311 {offsets = [0, 32], sizes = [4, 32], strides = [1, 1]} : vector<4x128xf32> to vector<4x32xf32>
    %319 = arith.negf %318 : vector<4x32xf32>
    %320 = math.exp %319 : vector<4x32xf32>
    %cst_79 = arith.constant 1.000000e+00 : f32
    %321 = vector.broadcast %cst_79 : f32 to vector<4x32xf32>
    %322 = arith.addf %321, %320 : vector<4x32xf32>
    %323 = arith.divf %321, %322 : vector<4x32xf32>
    %324 = vector.extract_strided_slice %311 {offsets = [0, 64], sizes = [4, 32], strides = [1, 1]} : vector<4x128xf32> to vector<4x32xf32>
    %325 = vector.extract_strided_slice %311 {offsets = [0, 96], sizes = [4, 32], strides = [1, 1]} : vector<4x128xf32> to vector<4x32xf32>
    %326 = arith.mulf %317, %325 : vector<4x32xf32>
    %327 = arith.addf %324, %326 : vector<4x32xf32>
    %328 = math.tanh %327 : vector<4x32xf32>
    %cst_80 = arith.constant 1.000000e+00 : f32
    %329 = vector.broadcast %cst_80 : f32 to vector<4x32xf32>
    %330 = arith.subf %329, %323 : vector<4x32xf32>
    %331 = arith.mulf %330, %328 : vector<4x32xf32>
    %332 = arith.mulf %323, %279 : vector<4x32xf32>
    %333 = arith.addf %331, %332 : vector<4x32xf32>
    %c20 = arith.constant 20 : index
    %c0_81 = arith.constant 0 : index
    %334 = vector.load %arg6[%c20, %c0_81] : memref<32x32xf32, #tpu.memory_space<vmem>>, vector<4x32xf32>
    tpu.vector_store %arg6[%c20, %c0_81], %333 {strides = array<i32>} : memref<32x32xf32, #tpu.memory_space<vmem>>, vector<4x32xf32>,
    %335 = tpu.concatenate %333, %307 in 1 : vector<4x32xf32>, vector<4x32xf32> -> vector<4x64xf32>
    %c6 = arith.constant 6 : index
    %c0_82 = arith.constant 0 : index
    %c0_83 = arith.constant 0 : index
    %336 = vector.load %arg1[%c6, %c0_82, %c0_83] : memref<8x4x128xf32, #tpu.memory_space<vmem>>, vector<1x4x128xf32>
    %337 = vector.shape_cast %336 : vector<1x4x128xf32> to vector<4x128xf32>
    %cst_84 = arith.constant dense<0.000000e+00> : vector<4x128xf32>
    %338 = tpu.matmul %335, %0, %cst_84 {dimension_numbers = #tpu.dot_dimension_numbers<[1], [0], [0], [1], [0, 0, 1, 1], [], []>} : vector<4x64xf32>, vector<64x128xf32>, vector<4x128xf32> -> vector<4x128xf32>
    %339 = arith.addf %337, %338 : vector<4x128xf32>
    %340 = vector.extract_strided_slice %339 {offsets = [0, 0], sizes = [4, 32], strides = [1, 1]} : vector<4x128xf32> to vector<4x32xf32>
    %341 = arith.negf %340 : vector<4x32xf32>
    %342 = math.exp %341 : vector<4x32xf32>
    %cst_85 = arith.constant 1.000000e+00 : f32
    %343 = vector.broadcast %cst_85 : f32 to vector<4x32xf32>
    %344 = arith.addf %343, %342 : vector<4x32xf32>
    %345 = arith.divf %343, %344 : vector<4x32xf32>
    %346 = vector.extract_strided_slice %339 {offsets = [0, 32], sizes = [4, 32], strides = [1, 1]} : vector<4x128xf32> to vector<4x32xf32>
    %347 = arith.negf %346 : vector<4x32xf32>
    %348 = math.exp %347 : vector<4x32xf32>
    %cst_86 = arith.constant 1.000000e+00 : f32
    %349 = vector.broadcast %cst_86 : f32 to vector<4x32xf32>
    %350 = arith.addf %349, %348 : vector<4x32xf32>
    %351 = arith.divf %349, %350 : vector<4x32xf32>
    %352 = vector.extract_strided_slice %339 {offsets = [0, 64], sizes = [4, 32], strides = [1, 1]} : vector<4x128xf32> to vector<4x32xf32>
    %353 = vector.extract_strided_slice %339 {offsets = [0, 96], sizes = [4, 32], strides = [1, 1]} : vector<4x128xf32> to vector<4x32xf32>
    %354 = arith.mulf %345, %353 : vector<4x32xf32>
    %355 = arith.addf %352, %354 : vector<4x32xf32>
    %356 = math.tanh %355 : vector<4x32xf32>
    %cst_87 = arith.constant 1.000000e+00 : f32
    %357 = vector.broadcast %cst_87 : f32 to vector<4x32xf32>
    %358 = arith.subf %357, %351 : vector<4x32xf32>
    %359 = arith.mulf %358, %356 : vector<4x32xf32>
    %360 = arith.mulf %351, %307 : vector<4x32xf32>
    %361 = arith.addf %359, %360 : vector<4x32xf32>
    %362 = tpu.concatenate %361, %333 in 1 : vector<4x32xf32>, vector<4x32xf32> -> vector<4x64xf32>
    %cst_88 = arith.constant dense<0.000000e+00> : vector<4x128xf32>
    %363 = tpu.matmul %362, %1, %cst_88 {dimension_numbers = #tpu.dot_dimension_numbers<[1], [0], [0], [1], [0, 0, 1, 1], [], []>} : vector<4x64xf32>, vector<64x128xf32>, vector<4x128xf32> -> vector<4x128xf32>
    %364 = vector.broadcast %2 : vector<1x128xf32> to vector<4x128xf32>
    %365 = arith.addf %364, %363 : vector<4x128xf32>
    %366 = vector.extract_strided_slice %365 {offsets = [0, 0], sizes = [4, 32], strides = [1, 1]} : vector<4x128xf32> to vector<4x32xf32>
    %367 = arith.negf %366 : vector<4x32xf32>
    %368 = math.exp %367 : vector<4x32xf32>
    %cst_89 = arith.constant 1.000000e+00 : f32
    %369 = vector.broadcast %cst_89 : f32 to vector<4x32xf32>
    %370 = arith.addf %369, %368 : vector<4x32xf32>
    %371 = arith.divf %369, %370 : vector<4x32xf32>
    %372 = vector.extract_strided_slice %365 {offsets = [0, 32], sizes = [4, 32], strides = [1, 1]} : vector<4x128xf32> to vector<4x32xf32>
    %373 = arith.negf %372 : vector<4x32xf32>
    %374 = math.exp %373 : vector<4x32xf32>
    %cst_90 = arith.constant 1.000000e+00 : f32
    %375 = vector.broadcast %cst_90 : f32 to vector<4x32xf32>
    %376 = arith.addf %375, %374 : vector<4x32xf32>
    %377 = arith.divf %375, %376 : vector<4x32xf32>
    %378 = vector.extract_strided_slice %365 {offsets = [0, 64], sizes = [4, 32], strides = [1, 1]} : vector<4x128xf32> to vector<4x32xf32>
    %379 = vector.extract_strided_slice %365 {offsets = [0, 96], sizes = [4, 32], strides = [1, 1]} : vector<4x128xf32> to vector<4x32xf32>
    %380 = arith.mulf %371, %379 : vector<4x32xf32>
    %381 = arith.addf %378, %380 : vector<4x32xf32>
    %382 = math.tanh %381 : vector<4x32xf32>
    %cst_91 = arith.constant 1.000000e+00 : f32
    %383 = vector.broadcast %cst_91 : f32 to vector<4x32xf32>
    %384 = arith.subf %383, %377 : vector<4x32xf32>
    %385 = arith.mulf %384, %382 : vector<4x32xf32>
    %386 = arith.mulf %377, %333 : vector<4x32xf32>
    %387 = arith.addf %385, %386 : vector<4x32xf32>
    %c24 = arith.constant 24 : index
    %c0_92 = arith.constant 0 : index
    %388 = vector.load %arg6[%c24, %c0_92] : memref<32x32xf32, #tpu.memory_space<vmem>>, vector<4x32xf32>
    tpu.vector_store %arg6[%c24, %c0_92], %387 {strides = array<i32>} : memref<32x32xf32, #tpu.memory_space<vmem>>, vector<4x32xf32>,
    %389 = tpu.concatenate %387, %361 in 1 : vector<4x32xf32>, vector<4x32xf32> -> vector<4x64xf32>
    %c7 = arith.constant 7 : index
    %c0_93 = arith.constant 0 : index
    %c0_94 = arith.constant 0 : index
    %390 = vector.load %arg1[%c7, %c0_93, %c0_94] : memref<8x4x128xf32, #tpu.memory_space<vmem>>, vector<1x4x128xf32>
    %391 = vector.shape_cast %390 : vector<1x4x128xf32> to vector<4x128xf32>
    %cst_95 = arith.constant dense<0.000000e+00> : vector<4x128xf32>
    %392 = tpu.matmul %389, %0, %cst_95 {dimension_numbers = #tpu.dot_dimension_numbers<[1], [0], [0], [1], [0, 0, 1, 1], [], []>} : vector<4x64xf32>, vector<64x128xf32>, vector<4x128xf32> -> vector<4x128xf32>
    %393 = arith.addf %391, %392 : vector<4x128xf32>
    %394 = vector.extract_strided_slice %393 {offsets = [0, 0], sizes = [4, 32], strides = [1, 1]} : vector<4x128xf32> to vector<4x32xf32>
    %395 = arith.negf %394 : vector<4x32xf32>
    %396 = math.exp %395 : vector<4x32xf32>
    %cst_96 = arith.constant 1.000000e+00 : f32
    %397 = vector.broadcast %cst_96 : f32 to vector<4x32xf32>
    %398 = arith.addf %397, %396 : vector<4x32xf32>
    %399 = arith.divf %397, %398 : vector<4x32xf32>
    %400 = vector.extract_strided_slice %393 {offsets = [0, 32], sizes = [4, 32], strides = [1, 1]} : vector<4x128xf32> to vector<4x32xf32>
    %401 = arith.negf %400 : vector<4x32xf32>
    %402 = math.exp %401 : vector<4x32xf32>
    %cst_97 = arith.constant 1.000000e+00 : f32
    %403 = vector.broadcast %cst_97 : f32 to vector<4x32xf32>
    %404 = arith.addf %403, %402 : vector<4x32xf32>
    %405 = arith.divf %403, %404 : vector<4x32xf32>
    %406 = vector.extract_strided_slice %393 {offsets = [0, 64], sizes = [4, 32], strides = [1, 1]} : vector<4x128xf32> to vector<4x32xf32>
    %407 = vector.extract_strided_slice %393 {offsets = [0, 96], sizes = [4, 32], strides = [1, 1]} : vector<4x128xf32> to vector<4x32xf32>
    %408 = arith.mulf %399, %407 : vector<4x32xf32>
    %409 = arith.addf %406, %408 : vector<4x32xf32>
    %410 = math.tanh %409 : vector<4x32xf32>
    %cst_98 = arith.constant 1.000000e+00 : f32
    %411 = vector.broadcast %cst_98 : f32 to vector<4x32xf32>
    %412 = arith.subf %411, %405 : vector<4x32xf32>
    %413 = arith.mulf %412, %410 : vector<4x32xf32>
    %414 = arith.mulf %405, %361 : vector<4x32xf32>
    %415 = arith.addf %413, %414 : vector<4x32xf32>
    %416 = tpu.concatenate %415, %387 in 1 : vector<4x32xf32>, vector<4x32xf32> -> vector<4x64xf32>
    %cst_99 = arith.constant dense<0.000000e+00> : vector<4x128xf32>
    %417 = tpu.matmul %416, %1, %cst_99 {dimension_numbers = #tpu.dot_dimension_numbers<[1], [0], [0], [1], [0, 0, 1, 1], [], []>} : vector<4x64xf32>, vector<64x128xf32>, vector<4x128xf32> -> vector<4x128xf32>
    %418 = vector.broadcast %2 : vector<1x128xf32> to vector<4x128xf32>
    %419 = arith.addf %418, %417 : vector<4x128xf32>
    %420 = vector.extract_strided_slice %419 {offsets = [0, 0], sizes = [4, 32], strides = [1, 1]} : vector<4x128xf32> to vector<4x32xf32>
    %421 = arith.negf %420 : vector<4x32xf32>
    %422 = math.exp %421 : vector<4x32xf32>
    %cst_100 = arith.constant 1.000000e+00 : f32
    %423 = vector.broadcast %cst_100 : f32 to vector<4x32xf32>
    %424 = arith.addf %423, %422 : vector<4x32xf32>
    %425 = arith.divf %423, %424 : vector<4x32xf32>
    %426 = vector.extract_strided_slice %419 {offsets = [0, 32], sizes = [4, 32], strides = [1, 1]} : vector<4x128xf32> to vector<4x32xf32>
    %427 = arith.negf %426 : vector<4x32xf32>
    %428 = math.exp %427 : vector<4x32xf32>
    %cst_101 = arith.constant 1.000000e+00 : f32
    %429 = vector.broadcast %cst_101 : f32 to vector<4x32xf32>
    %430 = arith.addf %429, %428 : vector<4x32xf32>
    %431 = arith.divf %429, %430 : vector<4x32xf32>
    %432 = vector.extract_strided_slice %419 {offsets = [0, 64], sizes = [4, 32], strides = [1, 1]} : vector<4x128xf32> to vector<4x32xf32>
    %433 = vector.extract_strided_slice %419 {offsets = [0, 96], sizes = [4, 32], strides = [1, 1]} : vector<4x128xf32> to vector<4x32xf32>
    %434 = arith.mulf %425, %433 : vector<4x32xf32>
    %435 = arith.addf %432, %434 : vector<4x32xf32>
    %436 = math.tanh %435 : vector<4x32xf32>
    %cst_102 = arith.constant 1.000000e+00 : f32
    %437 = vector.broadcast %cst_102 : f32 to vector<4x32xf32>
    %438 = arith.subf %437, %431 : vector<4x32xf32>
    %439 = arith.mulf %438, %436 : vector<4x32xf32>
    %440 = arith.mulf %431, %387 : vector<4x32xf32>
    %441 = arith.addf %439, %440 : vector<4x32xf32>
    %c28 = arith.constant 28 : index
    %c0_103 = arith.constant 0 : index
    %442 = vector.load %arg6[%c28, %c0_103] : memref<32x32xf32, #tpu.memory_space<vmem>>, vector<4x32xf32>
    tpu.vector_store %arg6[%c28, %c0_103], %441 {strides = array<i32>} : memref<32x32xf32, #tpu.memory_space<vmem>>, vector<4x32xf32>,
    %c0_104 = arith.constant 0 : index
    %c0_105 = arith.constant 0 : index
    %c0_106 = arith.constant 0 : index
    %443 = vector.load %arg5[%c0_104, %c0_105, %c0_106] : memref<2x4x32xf32, #tpu.memory_space<vmem>>, vector<1x4x32xf32>
    %444 = vector.shape_cast %443 : vector<1x4x32xf32> to vector<4x32xf32>
    %445 = vector.shape_cast %415 : vector<4x32xf32> to vector<1x4x32xf32>
    tpu.vector_store %arg5[%c0_104, %c0_105, %c0_106], %445 {strides = array<i32>} : memref<2x4x32xf32, #tpu.memory_space<vmem>>, vector<1x4x32xf32>,
    %c1_107 = arith.constant 1 : index
    %c0_108 = arith.constant 0 : index
    %c0_109 = arith.constant 0 : index
    %446 = vector.load %arg5[%c1_107, %c0_108, %c0_109] : memref<2x4x32xf32, #tpu.memory_space<vmem>>, vector<1x4x32xf32>
    %447 = vector.shape_cast %446 : vector<1x4x32xf32> to vector<4x32xf32>
    %448 = vector.shape_cast %441 : vector<4x32xf32> to vector<1x4x32xf32>
    tpu.vector_store %arg5[%c1_107, %c0_108, %c0_109], %448 {strides = array<i32>} : memref<2x4x32xf32, #tpu.memory_space<vmem>>, vector<1x4x32xf32>,
    %c0_110 = arith.constant 0 : index
    %c0_111 = arith.constant 0 : index
    %449 = vector.load %arg6[%c0_110, %c0_111] : memref<32x32xf32, #tpu.memory_space<vmem>>, vector<32x32xf32>
    %cst_112 = arith.constant dense<0.000000e+00> : vector<32x128xf32>
    %450 = tpu.matmul %449, %3, %cst_112 {dimension_numbers = #tpu.dot_dimension_numbers<[1], [0], [0], [1], [0, 0, 1, 1], [], []>} : vector<32x32xf32>, vector<32x128xf32>, vector<32x128xf32> -> vector<32x128xf32>
    %451 = vector.broadcast %4 : vector<1x128xf32> to vector<32x128xf32>
    %452 = arith.addf %450, %451 : vector<32x128xf32>
    %cst_113 = arith.constant dense<0xFF800000> : vector<32xf32>
    %453 = vector.multi_reduction <maximumf>, %452, %cst_113 [1] : vector<32x128xf32> to vector<32xf32>
    %454 = vector.shape_cast %453 : vector<32xf32> to vector<32x1xf32>
    %455 = vector.broadcast %454 : vector<32x1xf32> to vector<32x128xf32>
    %456 = arith.subf %452, %455 : vector<32x128xf32>
    %457 = math.exp %456 : vector<32x128xf32>
    %cst_114 = arith.constant dense<0.000000e+00> : vector<32xf32>
    %458 = vector.multi_reduction <add>, %457, %cst_114 [1] : vector<32x128xf32> to vector<32xf32>
    %459 = vector.shape_cast %458 : vector<32xf32> to vector<32x1xf32>
    %460 = math.log %459 : vector<32x1xf32>
    %461 = arith.addf %460, %454 : vector<32x1xf32>
    %462 = vector.broadcast %461 : vector<32x1xf32> to vector<32x128xf32>
    %463 = arith.subf %452, %462 : vector<32x128xf32>
    %c0_115 = arith.constant 0 : index
    %c0_116 = arith.constant 0 : index
    %464 = vector.load %arg4[%c0_115, %c0_116] : memref<32x128xf32, #tpu.memory_space<vmem>>, vector<32x128xf32>
    tpu.vector_store %arg4[%c0_115, %c0_116], %463 {strides = array<i32>} : memref<32x128xf32, #tpu.memory_space<vmem>>, vector<32x128xf32>,
    return
  }
  func.func @transform_0(%arg0: i32) -> (i32, i32, i32) {
    %c0_i32 = arith.constant 0 : i32
    %c0_i32_0 = arith.constant 0 : i32
    %c0_i32_1 = arith.constant 0 : i32
    %c0_i32_2 = arith.constant 0 : i32
    return %c0_i32, %c0_i32_0, %c0_i32_1 : i32, i32, i32
  }
  func.func @transform_1(%arg0: i32) -> (i32, i32) {
    %c0_i32 = arith.constant 0 : i32
    %c0_i32_0 = arith.constant 0 : i32
    %c0_i32_1 = arith.constant 0 : i32
    return %c0_i32, %c0_i32_0 : i32, i32
  }
  func.func @transform_2(%arg0: i32) -> (i32, i32, i32) {
    %c0_i32 = arith.constant 0 : i32
    %c0_i32_0 = arith.constant 0 : i32
    %c0_i32_1 = arith.constant 0 : i32
    %c0_i32_2 = arith.constant 0 : i32
    return %c0_i32, %c0_i32_0, %c0_i32_1 : i32, i32, i32
  }
  func.func @transform_3(%arg0: i32) -> (i32, i32) {
    %c0_i32 = arith.constant 0 : i32
    %c0_i32_0 = arith.constant 0 : i32
    %c0_i32_1 = arith.constant 0 : i32
    return %c0_i32, %c0_i32_0 : i32, i32
  }
  func.func @transform_4(%arg0: i32) -> (i32, i32, i32) {
    %c0_i32 = arith.constant 0 : i32
    %c0_i32_0 = arith.constant 0 : i32
    %c0_i32_1 = arith.constant 0 : i32
    %c0_i32_2 = arith.constant 0 : i32
    return %c0_i32, %c0_i32_0, %c0_i32_1 : i32, i32, i32
  }
}

</mosaic_0001>

<bundles_post_ra>
// kernel: tpu_custom_call.1
= control target key start
LH: loop header
LB: loop body
LE: loop exit
PB: predicated region body
PF: predicated region fallthrough
CT: control target
= control target key end

     0   :  { %10 = vsyncpa [#allocation4], 0  ;;  %s3317_s0 = inlined_call_operand.hbm [shape: f32[8,4,128], index: 0, kind: input, shape index: {}]   ;;  %s3318_s1 = inlined_call_operand.hbm [shape: f32[176,128], index: 1, kind: input, shape index: {}]   ;;  %s3319_s2 = inlined_call_operand.hbm [shape: f32[3,4,32], index: 2, kind: input, shape index: {}]   ;;  %s3320_s3 = inlined_call_operand.hbm [shape: f32[32,128], index: 3, kind: output, shape index: {0}]   ;;  %s3321_s4 = inlined_call_operand.hbm [shape: f32[2,4,32], index: 4, kind: output, shape index: {1}]  }
   0x1   :  { %11 = vsyncpa [#allocation7], 0 }
   0x2   :  { %12 = vsyncpa [#allocation5], 0 }
   0x3   :  { %13 = vsyncpa [#allocation11], 0  ;;  %s2744_s15 = smov [#allocation6]  }
   0x4   :  { %s31_s16 = sshll.u32 %s2744_s15, 4  ;;  %s32_s16 = int_to_ptr.vmem [resolvable:$true] %s31_s16 }
   0x5   :  { %s2644_s17 = scalar_lea.vmem %s32_s16, 2816  ;;  %p2649_p1 = scmp.lt.s32.totalorder %s32_s16, %s32_s16 }
   0x6   :  { %p2645_p0 = scmp.ne.s32.totalorder %s32_s16, %s2644_s17  ;;  %p2650_p2 = scmp.lt.s32.totalorder %s2644_s17, %s2644_s17 }
   0x8   :  { %p2651_p3 = por %p2650_p2, %p2649_p1 }
   0xa   :  { %p2652_p4 = pnand %p2651_p3, %p2645_p0 }
   0xc   :  { %2655 = shalt.err (!%p2652_p4)
}
   0xd   :  { %s2745_s18 = smov 128   ;;  %s2746_s19 = smov 8  }
   0xe   :  { %37 = dma.hbm_to_vmem [thread:$0]  %s3318_s1, 2816, %s32_s16, [#allocation7], %s2745_s18, %s2745_s18, %s2746_s19  }
   0xf   :  { %s2747_s22 = smov [#allocation3]  }
  0x10   :  { %s19_s23 = sshll.u32 %s2747_s22, 4  ;;  %s20_s23 = int_to_ptr.vmem [resolvable:$true] %s19_s23 }
  0x11   :  { %s2664_s24 = scalar_lea.vmem %s20_s23, 512  ;;  %p2669_p6 = scmp.lt.s32.totalorder %s20_s23, %s20_s23 }
  0x12   :  { %p2665_p5 = scmp.ne.s32.totalorder %s20_s23, %s2664_s24  ;;  %p2670_p7 = scmp.lt.s32.totalorder %s2664_s24, %s2664_s24 }
  0x14   :  { %p2671_p8 = por %p2670_p7, %p2669_p6 }
  0x16   :  { %p2672_p9 = pnand %p2671_p8, %p2665_p5 }
  0x18   :  { %2675 = shalt.err (!%p2672_p9)
}
  0x19   :  { %s2748_s25 = smov 64   ;;  %s2749_s26 = smov 4  }
  0x1a   :  { %25 = dma.hbm_to_vmem [thread:$0]  %s3317_s0, 512, %s20_s23, [#allocation4], %s2748_s25, %s2748_s25, %s2749_s26  }
  0x1b   :  { %s2750_s1 = smov [#allocation8]  }
  0x1c   :  { %s43_s29 = sshll.u32 %s2750_s1, 4  ;;  %s44_s29 = int_to_ptr.vmem [resolvable:$true] %s43_s29 }
  0x1d   :  { %s2684_s30 = scalar_lea.vmem %s44_s29, 192  ;;  %p2689_p11 = scmp.lt.s32.totalorder %s44_s29, %s44_s29 }
  0x1e   :  { %p2685_p10 = scmp.ne.s32.totalorder %s44_s29, %s2684_s30  ;;  %p2690_p12 = scmp.lt.s32.totalorder %s2684_s30, %s2684_s30 }
  0x20   :  { %p2691_p13 = por %p2690_p12, %p2689_p11 }
  0x22   :  { %p2692_p0 = pnand %p2691_p13, %p2685_p10 }
  0x24   :  { %2695 = shalt.err (!%p2692_p0)
}
  0x25   :  { %49 = dma.hbm_to_vmem [thread:$0]  %s3319_s2, 192, %s44_s29, [#allocation7], %s2748_s25, %s2748_s25, %s2749_s26  }
  0x26   :  { %2736 = dma.done.wait [#allocation4], 512  }
  0x27   :  { %2737 = vsyncadd [#allocation4], 4294966784 }
  0x28   :  { %2738 = dma.done.wait [#allocation7], 3008  }
  0x29   :  { %2739 = vsyncadd [#allocation7], 4294964288  ;;  %v2751_v0 = vmov 0.0   ;;  %vm2752_vm0 = vmmov 0   ;;  %v81_v1 = vld [vmem:[#allocation8] sm:$0xf] }
  0x2a   :  { %2168 = vmatprep.subr.mxu0 %v2751_v0  ;;  %2184 = vmatprep.mubr.msk.f32.mxu0 %vm2752_vm0, %v2751_v0  ;;  %v2806_v2 = vld [vmem:[#allocation6 + $0x38] sm:$0xff]  ;;  %v2808_v3 = vld [vmem:[#allocation6 + $0x30] sm:$0xff]  ;;  %s2753_s0 = smov 32   ;;  %v2813_v4 = vld [vmem:[#allocation6 + $0x28] sm:$0xff]  ;;  %vm90_vm1 = vcmask 261120   ;;  %vm93_vm2 = vcmask 523264  }
  0x2b   :  { %2187 = vmatprep.subr.mxu1 %v2751_v0  ;;  %2203 = vmatprep.mubr.msk.f32.mxu1 %vm2752_vm0, %v2751_v0  ;;  %v2817_v5 = vld [vmem:[#allocation6 + $0x20] sm:$0xff]  ;;  %v2821_v6 = vld [vmem:[#allocation6 + $0x18] sm:$0xff]  ;;  %v2825_v7 = vld [vmem:[#allocation6 + $0x10] sm:$0xff]  ;;  %s2754_s2 = smov 96   ;;  %vm309_vm3 = vcmask 257024   ;;  %s2755_s7 = smov [#allocation10]  }
  0x2c   :  { %87 = vrot.lane.b32.xlu0 %v81_v1, %s2753_s0  ;;  %2169 = vmatpush3.msra.mxu0 %v2806_v2  ;;  %v2829_v8 = vld [vmem:[#allocation6 + $0x8] sm:$0xff]  ;;  %v2833_v9 = vld [vmem:[#allocation6] sm:$0xff]  ;;  %v85_v10 = vld [vmem:[#allocation8 + $0x8] sm:$0xf]  ;;  %s1961_s8 = sshll.u32 %s2755_s7, 4  ;;  %s1962_s8 = int_to_ptr.vmem [resolvable:$true] %s1961_s8 }
  0x2d   :  { %2170 = vmatprep.subr.mxu0 %v2751_v0  ;;  %v92_v13 = vld [vmem:[#allocation3] sm:$0xf]  ;;  %v2864_v25 = vld [vmem:[#allocation6 + $0x78] sm:$0xff]  ;;  %v2866_v26 = vld [vmem:[#allocation6 + $0x70] sm:$0xff]  ;;  %s2696_s9 = scalar_lea.vmem %s1962_s8, 128  ;;  %p2701_p2 = scmp.lt.s32.totalorder %s1962_s8, %s1962_s8 }
  0x2e   :  { %2171 = vmatpush3.msra.mxu0 %v2808_v3  ;;  %2188 = vmatpush3.msra.mxu1 %v2864_v25  ;;  %v2870_v27 = vld [vmem:[#allocation6 + $0x68] sm:$0xff]  ;;  %v2874_v28 = vld [vmem:[#allocation6 + $0x60] sm:$0xff]  ;;  %v2878_v29 = vld [vmem:[#allocation6 + $0x58] sm:$0xff]  ;;  %p2697_p1 = scmp.ne.s32.totalorder %s1962_s8, %s2696_s9  ;;  %p2702_p3 = scmp.lt.s32.totalorder %s2696_s9, %s2696_s9 }
  0x2f   :  { %2172 = vmatprep.subr.mxu0 %v2751_v0  ;;  %2189 = vmatprep.subr.mxu1 %v2751_v0  ;;  %v2882_v31 = vld [vmem:[#allocation6 + $0x50] sm:$0xff]  ;;  %v2887_v33 = vld [vmem:[#allocation6 + $0x48] sm:$0xff]  ;;  %v2894_v34 = vld [vmem:[#allocation6 + $0x40] sm:$0xff] }
  0x30   :  { %2173 = vmatpush3.msra.mxu0 %v2813_v4  ;;  %2190 = vmatpush3.msra.mxu1 %v2866_v26  ;;  %v83_v32 = vld [vmem:[#allocation8 + $0x4] sm:$0xf]  ;;  %v2923_v43 = vld [vmem:[#allocation6 + $0x80] ss:$0 sm:$0xff]  ;;  %v313_v63 = vld [vmem:[#allocation3 + $0x4] sm:$0xf]  ;;  %p2703_p4 = por %p2702_p3, %p2701_p2 }
  0x31   :  { %2174 = vmatprep.subr.mxu0 %v2751_v0  ;;  %2191 = vmatprep.subr.mxu1 %v2751_v0 }
  0x32   :  { %2175 = vmatpush3.msra.mxu0 %v2817_v5  ;;  %2192 = vmatpush3.msra.mxu1 %v2870_v27  ;;  %p2704_p5 = pnand %p2703_p4, %p2697_p1 }
  0x33   :  { %2176 = vmatprep.subr.mxu0 %v2751_v0  ;;  %2193 = vmatprep.subr.mxu1 %v2751_v0 }
  0x34   :  { %2177 = vmatpush3.msra.mxu0 %v2821_v6  ;;  %2194 = vmatpush3.msra.mxu1 %v2874_v28 }
  0x35   :  { %2178 = vmatprep.subr.mxu0 %v2751_v0  ;;  %2195 = vmatprep.subr.mxu1 %v2751_v0 }
  0x36   :  { %2179 = vmatpush3.msra.mxu0 %v2825_v7  ;;  %2196 = vmatpush3.msra.mxu1 %v2878_v29 }
  0x37   :  { %2180 = vmatprep.subr.mxu0 %v2751_v0  ;;  %2197 = vmatprep.subr.mxu1 %v2751_v0 }
  0x38   :  { %2181 = vmatpush3.msra.mxu0 %v2829_v8  ;;  %2198 = vmatpush3.msra.mxu1 %v2882_v31 }
  0x39   :  { %2182 = vmatprep.subr.mxu0 %v2751_v0  ;;  %2199 = vmatprep.subr.mxu1 %v2751_v0 }
  0x3a   :  { %2183 = vmatpush3.msra.mxu0 %v2833_v9  ;;  %2200 = vmatpush3.msra.mxu1 %v2887_v33 }
  0x3b   :  { %2206 = vmatprep.subr.mxu0 %v2751_v0  ;;  %2201 = vmatprep.subr.mxu1 %v2751_v0 }
  0x3c   :  { %2202 = vmatpush3.msra.mxu1 %v2894_v34 }
  0x3d   :  { %2225 = vmatprep.subr.mxu1 %v2751_v0 }
  0x9e   :  { %v2839_v11 = vpop.permute.xlu0 %87 }
  0x9f   :  { %v91_v12 = vsel %vm90_vm1, %v85_v10, %v2839_v11 }
  0xa0   :  { %2185 = vmatmul.mubr.msk.f32.vlgmr.msra.gmra.mxu0 %vm93_vm2, %v91_v12 }
  0xa1   :  { %2207 = vmatpush3.msra.mxu0 %v2806_v2  ;;  %2222 = vmatprep.mubr.msk.f32.mxu0 %vm2752_vm0, %v2751_v0 }
  0xa2   :  { %2208 = vmatprep.subr.mxu0 %v2751_v0 }
  0xa3   :  { %2209 = vmatpush3.msra.mxu0 %v2808_v3 }
  0xa4   :  { %2210 = vmatprep.subr.mxu0 %v2751_v0 }
  0xa5   :  { %2211 = vmatpush3.msra.mxu0 %v2813_v4 }
  0xa6   :  { %2212 = vmatprep.subr.mxu0 %v2751_v0 }
  0xa7   :  { %2213 = vmatpush3.msra.mxu0 %v2817_v5 }
  0xa8   :  { %2214 = vmatprep.subr.mxu0 %v2751_v0 }
  0xa9   :  { %2215 = vmatpush3.msra.mxu0 %v2821_v6 }
  0xaa   :  { %2216 = vmatprep.subr.mxu0 %v2751_v0 }
  0xab   :  { %2217 = vmatpush3.msra.mxu0 %v2825_v7 }
  0xac   :  { %2218 = vmatprep.subr.mxu0 %v2751_v0 }
  0xad   :  { %2219 = vmatpush3.msra.mxu0 %v2829_v8 }
  0xae   :  { %2220 = vmatprep.subr.mxu0 %v2751_v0 }
  0xaf   :  { %2221 = vmatpush3.msra.mxu0 %v2833_v9 }
  0xb0   :  { %2244 = vmatprep.subr.mxu0 %v2751_v0 }
 0x160   :  { %v163_v14 = vpop.f32.mrf.mxu0 }
 0x161   :  { %v167_v15 = vadd.f32 %v163_v14, %v92_v13 }
 0x162   :  { %v2186_v16 = vpop.f32.mrf.mxu0 }
 0x163   :  { %175 = vrot.lane.b32.xlu0 %v167_v15, %s2753_s0  ;;  %v1979_v17 = vmul.f32 -1.442695, %v167_v15 }
 0x165   :  { %2507 = vpow2.f32 %v1979_v17 }
 0x172   :  { %v2508_v18 = vpop.eup %2507 }
 0x173   :  { %v171_v19 = vadd.f32 1.0, %v2508_v18 }
 0x175   :  { %2509 = vrcp.f32 %v171_v19 }
 0x182   :  { %v2510_v20 = vpop.eup %2509 }
 0x183   :  { %v185_v35 = vsub.f32 1.0, %v2510_v20  ;;  %v191_v37 = vmul.f32 %v2510_v20, %v2839_v11 }
 0x1d5   :  { %v176_v21 = vpop.permute.xlu0 %175 }
 0x1d6   :  { %v178_v22 = vmul.f32 %v2510_v20, %v176_v21 }
 0x1d8   :  { %180 = vrot.lane.b32.xlu1 %v178_v22, %s2748_s25 }
 0x24a   :  { %v181_v23 = vpop.permute.xlu1 %180 }
 0x24b   :  { %v183_v24 = vadd.f32 %v181_v23, %v167_v15 }
 0x24d   :  { %2511 = vtanh.f32 %v183_v24 }
 0x25a   :  { %v2512_v30 = vpop.eup %2511 }
 0x25b   :  { %187 = vrot.lane.b32.xlu1 %v2512_v30, %s2754_s2 }
 0x25f   :  { %198 = vrot.lane.b32.xlu1 %v83_v32, %s2753_s0 }
 0x2cd   :  { %v188_v36 = vpop.permute.xlu1 %187 }
 0x2ce   :  { %v190_v38 = vmul.f32 %v188_v36, %v185_v35 }
 0x2d0   :  { %v2899_v39 = vadd.f32 %v191_v37, %v190_v38 }
 0x2d1   :  { %v199_v40 = vpop.permute.xlu1 %198 }
 0x2d2   :  { %194 = vrot.lane.b32.xlu0 %v2899_v39, %s2754_s2 }
 0x344   :  { %v195_v41 = vpop.permute.xlu0 %194 }
 0x345   :  { %v201_v42 = vsel %vm90_vm1, %v195_v41, %v199_v40 }
 0x346   :  { %2204 = vmatmul.mubr.msk.f32.vlgmr.msra.gmra.mxu1 %vm93_vm2, %v201_v42 }
 0x347   :  { %2226 = vmatpush3.msra.mxu1 %v2864_v25  ;;  %2241 = vmatprep.mubr.msk.f32.mxu1 %vm2752_vm0, %v2751_v0 }
 0x348   :  { %2227 = vmatprep.subr.mxu1 %v2751_v0 }
 0x349   :  { %2228 = vmatpush3.msra.mxu1 %v2866_v26 }
 0x34a   :  { %2229 = vmatprep.subr.mxu1 %v2751_v0 }
 0x34b   :  { %2230 = vmatpush3.msra.mxu1 %v2870_v27 }
 0x34c   :  { %2231 = vmatprep.subr.mxu1 %v2751_v0 }
 0x34d   :  { %2232 = vmatpush3.msra.mxu1 %v2874_v28 }
 0x34e   :  { %2233 = vmatprep.subr.mxu1 %v2751_v0 }
 0x34f   :  { %2234 = vmatpush3.msra.mxu1 %v2878_v29 }
 0x350   :  { %2235 = vmatprep.subr.mxu1 %v2751_v0 }
 0x351   :  { %2236 = vmatpush3.msra.mxu1 %v2882_v31 }
 0x352   :  { %2237 = vmatprep.subr.mxu1 %v2751_v0 }
 0x353   :  { %2238 = vmatpush3.msra.mxu1 %v2887_v33 }
 0x354   :  { %2239 = vmatprep.subr.mxu1 %v2751_v0 }
 0x355   :  { %2240 = vmatpush3.msra.mxu1 %v2894_v34 }
 0x356   :  { %2263 = vmatprep.subr.mxu1 %v2751_v0 }
 0x406   :  { %v271_v44 = vpop.f32.mrf.mxu1 }
 0x407   :  { %v279_v45 = vadd.f32 %v2923_v43, %v271_v44 }
 0x408   :  { %v2205_v46 = vpop.f32.mrf.mxu1 }
 0x409   :  { %287 = vrot.lane.b32.xlu0 %v279_v45, %s2753_s0  ;;  %v1982_v47 = vmul.f32 -1.442695, %v279_v45 }
 0x40b   :  { %2513 = vpow2.f32 %v1982_v47 }
 0x418   :  { %v2514_v48 = vpop.eup %2513 }
 0x419   :  { %v283_v49 = vadd.f32 1.0, %v2514_v48 }
 0x41b   :  { %2515 = vrcp.f32 %v283_v49 }
 0x428   :  { %v2516_v50 = vpop.eup %2515 }
 0x429   :  { %v297_v56 = vsub.f32 1.0, %v2516_v50  ;;  %v303_v58 = vmul.f32 %v2516_v50, %v199_v40 }
 0x47b   :  { %v288_v51 = vpop.permute.xlu0 %287 }
 0x47c   :  { %v290_v52 = vmul.f32 %v2516_v50, %v288_v51 }
 0x47e   :  { %292 = vrot.lane.b32.xlu1 %v290_v52, %s2748_s25 }
 0x4f0   :  { %v293_v53 = vpop.permute.xlu1 %292 }
 0x4f1   :  { %v295_v54 = vadd.f32 %v293_v53, %v279_v45 }
 0x4f3   :  { %2517 = vtanh.f32 %v295_v54 }
 0x500   :  { %v2518_v55 = vpop.eup %2517 }
 0x501   :  { %299 = vrot.lane.b32.xlu0 %v2518_v55, %s2754_s2 }
 0x573   :  { %v300_v57 = vpop.permute.xlu0 %299 }
 0x574   :  { %v302_v59 = vmul.f32 %v300_v57, %v297_v56  ;;  %v524_v56 = vld [vmem:[#allocation3 + $0x8] sm:$0xf] }
 0x576   :  { %v2929_v60 = vadd.f32 %v303_v58, %v302_v59 }
 0x578   :  { %306 = vrot.lane.b32.xlu1 %v2929_v60, %s2754_s2 }
 0x5ea   :  { %v307_v61 = vpop.permute.xlu1 %306 }
 0x5eb   :  { %310 = vst.msk [vmem:[#allocation2] sm:$0xf] %vm309_vm3, %v307_v61  ;;  %v311_v62 = vsel %vm90_vm1, %v307_v61, %v2899_v39 }
 0x5ec   :  { %2223 = vmatmul.mubr.msk.f32.vlgmr.msra.gmra.mxu0 %vm93_vm2, %v311_v62 }
 0x5ed   :  { %2245 = vmatpush3.msra.mxu0 %v2806_v2  ;;  %2260 = vmatprep.mubr.msk.f32.mxu0 %vm2752_vm0, %v2751_v0 }
 0x5ee   :  { %2246 = vmatprep.subr.mxu0 %v2751_v0 }
 0x5ef   :  { %2247 = vmatpush3.msra.mxu0 %v2808_v3 }
 0x5f0   :  { %2248 = vmatprep.subr.mxu0 %v2751_v0 }
 0x5f1   :  { %2249 = vmatpush3.msra.mxu0 %v2813_v4 }
 0x5f2   :  { %2250 = vmatprep.subr.mxu0 %v2751_v0 }
 0x5f3   :  { %2251 = vmatpush3.msra.mxu0 %v2817_v5 }
 0x5f4   :  { %2252 = vmatprep.subr.mxu0 %v2751_v0 }
 0x5f5   :  { %2253 = vmatpush3.msra.mxu0 %v2821_v6 }
 0x5f6   :  { %2254 = vmatprep.subr.mxu0 %v2751_v0 }
 0x5f7   :  { %2255 = vmatpush3.msra.mxu0 %v2825_v7 }
 0x5f8   :  { %2256 = vmatprep.subr.mxu0 %v2751_v0 }
 0x5f9   :  { %2257 = vmatpush3.msra.mxu0 %v2829_v8 }
 0x5fa   :  { %2258 = vmatprep.subr.mxu0 %v2751_v0 }
 0x5fb   :  { %2259 = vmatpush3.msra.mxu0 %v2833_v9 }
 0x5fc   :  { %2282 = vmatprep.subr.mxu0 %v2751_v0 }
 0x6ac   :  { %v383_v1 = vpop.f32.mrf.mxu0 }
 0x6ad   :  { %v387_v10 = vadd.f32 %v383_v1, %v313_v63 }
 0x6ae   :  { %v2224_v11 = vpop.f32.mrf.mxu0 }
 0x6af   :  { %395 = vrot.lane.b32.xlu0 %v387_v10, %s2753_s0  ;;  %v1984_v12 = vmul.f32 -1.442695, %v387_v10 }
 0x6b1   :  { %2519 = vpow2.f32 %v1984_v12 }
 0x6be   :  { %v2520_v13 = vpop.eup %2519 }
 0x6bf   :  { %v391_v14 = vadd.f32 1.0, %v2520_v13 }
 0x6c1   :  { %2521 = vrcp.f32 %v391_v14 }
 0x6ce   :  { %v2522_v15 = vpop.eup %2521 }
 0x6cf   :  { %v405_v21 = vsub.f32 1.0, %v2522_v15  ;;  %v411_v23 = vmul.f32 %v2522_v15, %v2899_v39 }
 0x721   :  { %v396_v16 = vpop.permute.xlu0 %395 }
 0x722   :  { %v398_v17 = vmul.f32 %v2522_v15, %v396_v16 }
 0x724   :  { %400 = vrot.lane.b32.xlu1 %v398_v17, %s2748_s25 }
 0x796   :  { %v401_v18 = vpop.permute.xlu1 %400 }
 0x797   :  { %v403_v19 = vadd.f32 %v401_v18, %v387_v10 }
 0x799   :  { %2523 = vtanh.f32 %v403_v19 }
 0x7a6   :  { %v2524_v20 = vpop.eup %2523 }
 0x7a7   :  { %407 = vrot.lane.b32.xlu0 %v2524_v20, %s2754_s2 }
 0x819   :  { %v408_v22 = vpop.permute.xlu0 %407 }
 0x81a   :  { %v410_v24 = vmul.f32 %v408_v22, %v405_v21 }
 0x81c   :  { %v2959_v30 = vadd.f32 %v411_v23, %v410_v24 }
 0x81e   :  { %414 = vrot.lane.b32.xlu1 %v2959_v30, %s2754_s2 }
 0x890   :  { %v415_v32 = vpop.permute.xlu1 %414 }
 0x891   :  { %v417_v35 = vsel %vm90_vm1, %v415_v32, %v2929_v60 }
 0x892   :  { %2242 = vmatmul.mubr.msk.f32.vlgmr.msra.gmra.mxu1 %vm93_vm2, %v417_v35 }
 0x893   :  { %2264 = vmatpush3.msra.mxu1 %v2864_v25  ;;  %2279 = vmatprep.mubr.msk.f32.mxu1 %vm2752_vm0, %v2751_v0 }
 0x894   :  { %2265 = vmatprep.subr.mxu1 %v2751_v0 }
 0x895   :  { %2266 = vmatpush3.msra.mxu1 %v2866_v26 }
 0x896   :  { %2267 = vmatprep.subr.mxu1 %v2751_v0 }
 0x897   :  { %2268 = vmatpush3.msra.mxu1 %v2870_v27 }
 0x898   :  { %2269 = vmatprep.subr.mxu1 %v2751_v0 }
 0x899   :  { %2270 = vmatpush3.msra.mxu1 %v2874_v28 }
 0x89a   :  { %2271 = vmatprep.subr.mxu1 %v2751_v0 }
 0x89b   :  { %2272 = vmatpush3.msra.mxu1 %v2878_v29 }
 0x89c   :  { %2273 = vmatprep.subr.mxu1 %v2751_v0 }
 0x89d   :  { %2274 = vmatpush3.msra.mxu1 %v2882_v31 }
 0x89e   :  { %2275 = vmatprep.subr.mxu1 %v2751_v0 }
 0x89f   :  { %2276 = vmatpush3.msra.mxu1 %v2887_v33 }
 0x8a0   :  { %2277 = vmatprep.subr.mxu1 %v2751_v0 }
 0x8a1   :  { %2278 = vmatpush3.msra.mxu1 %v2894_v34 }
 0x8a2   :  { %2301 = vmatprep.subr.mxu1 %v2751_v0 }
 0x952   :  { %v487_v36 = vpop.f32.mrf.mxu1 }
 0x953   :  { %v491_v37 = vadd.f32 %v2923_v43, %v487_v36 }
 0x954   :  { %v2243_v38 = vpop.f32.mrf.mxu1 }
 0x955   :  { %499 = vrot.lane.b32.xlu0 %v491_v37, %s2753_s0  ;;  %v1986_v39 = vmul.f32 -1.442695, %v491_v37 }
 0x957   :  { %2525 = vpow2.f32 %v1986_v39 }
 0x964   :  { %v2526_v40 = vpop.eup %2525 }
 0x965   :  { %v495_v41 = vadd.f32 1.0, %v2526_v40 }
 0x967   :  { %2527 = vrcp.f32 %v495_v41 }
 0x974   :  { %v2528_v42 = vpop.eup %2527 }
 0x975   :  { %v509_v49 = vsub.f32 1.0, %v2528_v42  ;;  %v515_v51 = vmul.f32 %v2528_v42, %v2929_v60 }
 0x9c7   :  { %v500_v44 = vpop.permute.xlu0 %499 }
 0x9c8   :  { %v502_v45 = vmul.f32 %v2528_v42, %v500_v44 }
 0x9ca   :  { %504 = vrot.lane.b32.xlu1 %v502_v45, %s2748_s25 }
 0xa3c   :  { %v505_v46 = vpop.permute.xlu1 %504 }
 0xa3d   :  { %v507_v47 = vadd.f32 %v505_v46, %v491_v37 }
 0xa3f   :  { %2529 = vtanh.f32 %v507_v47 }
 0xa4c   :  { %v2530_v48 = vpop.eup %2529 }
 0xa4d   :  { %511 = vrot.lane.b32.xlu0 %v2530_v48, %s2754_s2 }
 0xabf   :  { %v512_v50 = vpop.permute.xlu0 %511 }
 0xac0   :  { %v514_v52 = vmul.f32 %v512_v50, %v509_v49  ;;  %v735_v49 = vld [vmem:[#allocation3 + $0xc] sm:$0xf] }
 0xac2   :  { %v2989_v53 = vadd.f32 %v515_v51, %v514_v52 }
 0xac4   :  { %518 = vrot.lane.b32.xlu1 %v2989_v53, %s2754_s2 }
 0xb36   :  { %v519_v54 = vpop.permute.xlu1 %518 }
 0xb37   :  { %521 = vst.msk [vmem:[#allocation2 + $0x4] sm:$0xf] %vm309_vm3, %v519_v54  ;;  %v522_v55 = vsel %vm90_vm1, %v519_v54, %v2959_v30 }
 0xb38   :  { %2261 = vmatmul.mubr.msk.f32.vlgmr.msra.gmra.mxu0 %vm93_vm2, %v522_v55 }
 0xb39   :  { %2283 = vmatpush3.msra.mxu0 %v2806_v2  ;;  %2298 = vmatprep.mubr.msk.f32.mxu0 %vm2752_vm0, %v2751_v0 }
 0xb3a   :  { %2284 = vmatprep.subr.mxu0 %v2751_v0 }
 0xb3b   :  { %2285 = vmatpush3.msra.mxu0 %v2808_v3 }
 0xb3c   :  { %2286 = vmatprep.subr.mxu0 %v2751_v0 }
 0xb3d   :  { %2287 = vmatpush3.msra.mxu0 %v2813_v4 }
 0xb3e   :  { %2288 = vmatprep.subr.mxu0 %v2751_v0 }
 0xb3f   :  { %2289 = vmatpush3.msra.mxu0 %v2817_v5 }
 0xb40   :  { %2290 = vmatprep.subr.mxu0 %v2751_v0 }
 0xb41   :  { %2291 = vmatpush3.msra.mxu0 %v2821_v6 }
 0xb42   :  { %2292 = vmatprep.subr.mxu0 %v2751_v0 }
 0xb43   :  { %2293 = vmatpush3.msra.mxu0 %v2825_v7 }
 0xb44   :  { %2294 = vmatprep.subr.mxu0 %v2751_v0 }
 0xb45   :  { %2295 = vmatpush3.msra.mxu0 %v2829_v8 }
 0xb46   :  { %2296 = vmatprep.subr.mxu0 %v2751_v0 }
 0xb47   :  { %2297 = vmatpush3.msra.mxu0 %v2833_v9 }
 0xb48   :  { %2320 = vmatprep.subr.mxu0 %v2751_v0 }
 0xbf8   :  { %v594_v57 = vpop.f32.mrf.mxu0 }
 0xbf9   :  { %v598_v58 = vadd.f32 %v594_v57, %v524_v56 }
 0xbfa   :  { %v2262_v59 = vpop.f32.mrf.mxu0 }
 0xbfb   :  { %606 = vrot.lane.b32.xlu0 %v598_v58, %s2753_s0  ;;  %v1988_v60 = vmul.f32 -1.442695, %v598_v58 }
 0xbfd   :  { %2531 = vpow2.f32 %v1988_v60 }
 0xc0a   :  { %v2532_v61 = vpop.eup %2531 }
 0xc0b   :  { %v602_v62 = vadd.f32 1.0, %v2532_v61 }
 0xc0d   :  { %2533 = vrcp.f32 %v602_v62 }
 0xc1a   :  { %v2534_v63 = vpop.eup %2533 }
 0xc1b   :  { %v616_v14 = vsub.f32 1.0, %v2534_v63  ;;  %v622_v16 = vmul.f32 %v2534_v63, %v2959_v30 }
 0xc6d   :  { %v607_v1 = vpop.permute.xlu0 %606 }
 0xc6e   :  { %v609_v10 = vmul.f32 %v2534_v63, %v607_v1 }
 0xc70   :  { %611 = vrot.lane.b32.xlu1 %v609_v10, %s2748_s25 }
 0xce2   :  { %v612_v11 = vpop.permute.xlu1 %611 }
 0xce3   :  { %v614_v12 = vadd.f32 %v612_v11, %v598_v58 }
 0xce5   :  { %2535 = vtanh.f32 %v614_v12 }
 0xcf2   :  { %v2536_v13 = vpop.eup %2535 }
 0xcf3   :  { %618 = vrot.lane.b32.xlu0 %v2536_v13, %s2754_s2 }
 0xd65   :  { %v619_v15 = vpop.permute.xlu0 %618 }
 0xd66   :  { %v621_v17 = vmul.f32 %v619_v15, %v616_v14 }
 0xd68   :  { %v3019_v18 = vadd.f32 %v622_v16, %v621_v17 }
 0xd6a   :  { %625 = vrot.lane.b32.xlu1 %v3019_v18, %s2754_s2 }
 0xddc   :  { %v626_v19 = vpop.permute.xlu1 %625 }
 0xddd   :  { %v628_v20 = vsel %vm90_vm1, %v626_v19, %v2989_v53 }
 0xdde   :  { %2280 = vmatmul.mubr.msk.f32.vlgmr.msra.gmra.mxu1 %vm93_vm2, %v628_v20 }
 0xddf   :  { %2302 = vmatpush3.msra.mxu1 %v2864_v25  ;;  %2317 = vmatprep.mubr.msk.f32.mxu1 %vm2752_vm0, %v2751_v0 }
 0xde0   :  { %2303 = vmatprep.subr.mxu1 %v2751_v0 }
 0xde1   :  { %2304 = vmatpush3.msra.mxu1 %v2866_v26 }
 0xde2   :  { %2305 = vmatprep.subr.mxu1 %v2751_v0 }
 0xde3   :  { %2306 = vmatpush3.msra.mxu1 %v2870_v27 }
 0xde4   :  { %2307 = vmatprep.subr.mxu1 %v2751_v0 }
 0xde5   :  { %2308 = vmatpush3.msra.mxu1 %v2874_v28 }
 0xde6   :  { %2309 = vmatprep.subr.mxu1 %v2751_v0 }
 0xde7   :  { %2310 = vmatpush3.msra.mxu1 %v2878_v29 }
 0xde8   :  { %2311 = vmatprep.subr.mxu1 %v2751_v0 }
 0xde9   :  { %2312 = vmatpush3.msra.mxu1 %v2882_v31 }
 0xdea   :  { %2313 = vmatprep.subr.mxu1 %v2751_v0 }
 0xdeb   :  { %2314 = vmatpush3.msra.mxu1 %v2887_v33 }
 0xdec   :  { %2315 = vmatprep.subr.mxu1 %v2751_v0 }
 0xded   :  { %2316 = vmatpush3.msra.mxu1 %v2894_v34 }
 0xdee   :  { %2339 = vmatprep.subr.mxu1 %v2751_v0 }
 0xe9e   :  { %v698_v21 = vpop.f32.mrf.mxu1 }
 0xe9f   :  { %v702_v22 = vadd.f32 %v2923_v43, %v698_v21 }
 0xea0   :  { %v2281_v23 = vpop.f32.mrf.mxu1 }
 0xea1   :  { %710 = vrot.lane.b32.xlu0 %v702_v22, %s2753_s0  ;;  %v1990_v24 = vmul.f32 -1.442695, %v702_v22 }
 0xea3   :  { %2537 = vpow2.f32 %v1990_v24 }
 0xeb0   :  { %v2538_v30 = vpop.eup %2537 }
 0xeb1   :  { %v706_v32 = vadd.f32 1.0, %v2538_v30 }
 0xeb3   :  { %2539 = vrcp.f32 %v706_v32 }
 0xec0   :  { %v2540_v35 = vpop.eup %2539 }
 0xec1   :  { %v720_v41 = vsub.f32 1.0, %v2540_v35  ;;  %v726_v44 = vmul.f32 %v2540_v35, %v2989_v53 }
 0xf13   :  { %v711_v36 = vpop.permute.xlu0 %710 }
 0xf14   :  { %v713_v37 = vmul.f32 %v2540_v35, %v711_v36 }
 0xf16   :  { %715 = vrot.lane.b32.xlu1 %v713_v37, %s2748_s25 }
 0xf88   :  { %v716_v38 = vpop.permute.xlu1 %715 }
 0xf89   :  { %v718_v39 = vadd.f32 %v716_v38, %v702_v22 }
 0xf8b   :  { %2541 = vtanh.f32 %v718_v39 }
 0xf98   :  { %v2542_v40 = vpop.eup %2541 }
 0xf99   :  { %722 = vrot.lane.b32.xlu0 %v2542_v40, %s2754_s2 }
0x100b   :  { %v723_v42 = vpop.permute.xlu0 %722 }
0x100c   :  { %v725_v45 = vmul.f32 %v723_v42, %v720_v41 }
0x100e   :  { %v3049_v46 = vadd.f32 %v726_v44, %v725_v45 }
0x1010   :  { %729 = vrot.lane.b32.xlu1 %v3049_v46, %s2754_s2 }
0x1082   :  { %v730_v47 = vpop.permute.xlu1 %729 }
0x1083   :  { %732 = vst.msk [vmem:[#allocation2 + $0x8] sm:$0xf] %vm309_vm3, %v730_v47  ;;  %v733_v48 = vsel %vm90_vm1, %v730_v47, %v3019_v18 }
0x1084   :  { %2299 = vmatmul.mubr.msk.f32.vlgmr.msra.gmra.mxu0 %vm93_vm2, %v733_v48 }
0x1085   :  { %2321 = vmatpush3.msra.mxu0 %v2806_v2  ;;  %2336 = vmatprep.mubr.msk.f32.mxu0 %vm2752_vm0, %v2751_v0 }
0x1086   :  { %2322 = vmatprep.subr.mxu0 %v2751_v0 }
0x1087   :  { %2323 = vmatpush3.msra.mxu0 %v2808_v3 }
0x1088   :  { %2324 = vmatprep.subr.mxu0 %v2751_v0 }
0x1089   :  { %2325 = vmatpush3.msra.mxu0 %v2813_v4 }
0x108a   :  { %2326 = vmatprep.subr.mxu0 %v2751_v0 }
0x108b   :  { %2327 = vmatpush3.msra.mxu0 %v2817_v5 }
0x108c   :  { %2328 = vmatprep.subr.mxu0 %v2751_v0 }
0x108d   :  { %2329 = vmatpush3.msra.mxu0 %v2821_v6 }
0x108e   :  { %2330 = vmatprep.subr.mxu0 %v2751_v0 }
0x108f   :  { %2331 = vmatpush3.msra.mxu0 %v2825_v7 }
0x1090   :  { %2332 = vmatprep.subr.mxu0 %v2751_v0 }
0x1091   :  { %2333 = vmatpush3.msra.mxu0 %v2829_v8 }
0x1092   :  { %2334 = vmatprep.subr.mxu0 %v2751_v0 }
0x1093   :  { %2335 = vmatpush3.msra.mxu0 %v2833_v9 }
0x1094   :  { %2358 = vmatprep.subr.mxu0 %v2751_v0 }
0x1144   :  { %v805_v50 = vpop.f32.mrf.mxu0 }
0x1145   :  { %v809_v51 = vadd.f32 %v805_v50, %v735_v49 }
0x1146   :  { %v2300_v52 = vpop.f32.mrf.mxu0 }
0x1147   :  { %817 = vrot.lane.b32.xlu0 %v809_v51, %s2753_s0  ;;  %v1992_v53 = vmul.f32 -1.442695, %v809_v51 }
0x1149   :  { %2543 = vpow2.f32 %v1992_v53 }
0x1156   :  { %v2544_v54 = vpop.eup %2543 }
0x1157   :  { %v813_v55 = vadd.f32 1.0, %v2544_v54 }
0x1159   :  { %2545 = vrcp.f32 %v813_v55 }
0x1166   :  { %v2546_v56 = vpop.eup %2545 }
0x1167   :  { %v827_v62 = vsub.f32 1.0, %v2546_v56  ;;  %v833_v1 = vmul.f32 %v2546_v56, %v3019_v18 }
0x11b9   :  { %v818_v57 = vpop.permute.xlu0 %817 }
0x11ba   :  { %v820_v58 = vmul.f32 %v2546_v56, %v818_v57 }
0x11bc   :  { %822 = vrot.lane.b32.xlu1 %v820_v58, %s2748_s25 }
0x122e   :  { %v823_v59 = vpop.permute.xlu1 %822 }
0x122f   :  { %v825_v60 = vadd.f32 %v823_v59, %v809_v51 }
0x1231   :  { %2547 = vtanh.f32 %v825_v60 }
0x123e   :  { %v2548_v61 = vpop.eup %2547 }
0x123f   :  { %829 = vrot.lane.b32.xlu0 %v2548_v61, %s2754_s2 }
0x12b1   :  { %v830_v63 = vpop.permute.xlu0 %829 }
0x12b2   :  { %v832_v10 = vmul.f32 %v830_v63, %v827_v62 }
0x12b4   :  { %v3079_v11 = vadd.f32 %v833_v1, %v832_v10 }
0x12b6   :  { %836 = vrot.lane.b32.xlu1 %v3079_v11, %s2754_s2 }
0x1328   :  { %v837_v12 = vpop.permute.xlu1 %836 }
0x1329   :  { %v839_v13 = vsel %vm90_vm1, %v837_v12, %v3049_v46 }
0x132a   :  { %2318 = vmatmul.mubr.msk.f32.vlgmr.msra.gmra.mxu1 %vm93_vm2, %v839_v13 }
0x132b   :  { %2340 = vmatpush3.msra.mxu1 %v2864_v25  ;;  %2355 = vmatprep.mubr.msk.f32.mxu1 %vm2752_vm0, %v2751_v0 }
0x132c   :  { %2341 = vmatprep.subr.mxu1 %v2751_v0 }
0x132d   :  { %2342 = vmatpush3.msra.mxu1 %v2866_v26 }
0x132e   :  { %2343 = vmatprep.subr.mxu1 %v2751_v0 }
0x132f   :  { %2344 = vmatpush3.msra.mxu1 %v2870_v27 }
0x1330   :  { %2345 = vmatprep.subr.mxu1 %v2751_v0 }
0x1331   :  { %2346 = vmatpush3.msra.mxu1 %v2874_v28 }
0x1332   :  { %2347 = vmatprep.subr.mxu1 %v2751_v0 }
0x1333   :  { %2348 = vmatpush3.msra.mxu1 %v2878_v29 }
0x1334   :  { %2349 = vmatprep.subr.mxu1 %v2751_v0 }
0x1335   :  { %2350 = vmatpush3.msra.mxu1 %v2882_v31 }
0x1336   :  { %2351 = vmatprep.subr.mxu1 %v2751_v0 }
0x1337   :  { %2352 = vmatpush3.msra.mxu1 %v2887_v33 }
0x1338   :  { %2353 = vmatprep.subr.mxu1 %v2751_v0 }
0x1339   :  { %2354 = vmatpush3.msra.mxu1 %v2894_v34 }
0x133a   :  { %2377 = vmatprep.subr.mxu1 %v2751_v0 }
0x13ea   :  { %v909_v14 = vpop.f32.mrf.mxu1 }
0x13eb   :  { %v913_v15 = vadd.f32 %v2923_v43, %v909_v14 }
0x13ec   :  { %v2319_v16 = vpop.f32.mrf.mxu1 }
0x13ed   :  { %921 = vrot.lane.b32.xlu0 %v913_v15, %s2753_s0  ;;  %v1994_v17 = vmul.f32 -1.442695, %v913_v15 }
0x13ef   :  { %2549 = vpow2.f32 %v1994_v17 }
0x13fc   :  { %v2550_v18 = vpop.eup %2549 }
0x13fd   :  { %v917_v19 = vadd.f32 1.0, %v2550_v18 }
0x13ff   :  { %2551 = vrcp.f32 %v917_v19 }
0x140c   :  { %v2552_v20 = vpop.eup %2551 }
0x140d   :  { %v931_v32 = vsub.f32 1.0, %v2552_v20  ;;  %v937_v36 = vmul.f32 %v2552_v20, %v3049_v46 }
0x145f   :  { %v922_v21 = vpop.permute.xlu0 %921 }
0x1460   :  { %v924_v22 = vmul.f32 %v2552_v20, %v922_v21 }
0x1462   :  { %926 = vrot.lane.b32.xlu1 %v924_v22, %s2748_s25 }
0x14d4   :  { %v927_v23 = vpop.permute.xlu1 %926 }
0x14d5   :  { %v929_v24 = vadd.f32 %v927_v23, %v913_v15 }
0x14d7   :  { %2553 = vtanh.f32 %v929_v24 }
0x14e4   :  { %v2554_v30 = vpop.eup %2553 }
0x14e5   :  { %933 = vrot.lane.b32.xlu0 %v2554_v30, %s2754_s2  ;;  %v3181_v30 = vld [vmem:[#allocation6 + $0x30] sm:$0xff] }
0x1557   :  { %v934_v35 = vpop.permute.xlu0 %933 }
0x1558   :  { %v936_v37 = vmul.f32 %v934_v35, %v931_v32 }
0x155a   :  { %v3109_v38 = vadd.f32 %v937_v36, %v936_v37 }
0x155c   :  { %940 = vrot.lane.b32.xlu1 %v3109_v38, %s2754_s2 }
0x15ce   :  { %v941_v39 = vpop.permute.xlu1 %940 }
0x15cf   :  { %943 = vst.msk [vmem:[#allocation2 + $0xc] sm:$0xf] %vm309_vm3, %v941_v39  ;;  %v944_v40 = vsel %vm90_vm1, %v941_v39, %v3079_v11 }
0x15d0   :  { %2337 = vmatmul.mubr.msk.f32.vlgmr.msra.gmra.mxu0 %vm93_vm2, %v944_v40 }
0x15d1   :  { %2359 = vmatpush3.msra.mxu0 %v2806_v2  ;;  %2374 = vmatprep.mubr.msk.f32.mxu0 %vm2752_vm0, %v2751_v0 }
0x15d2   :  { %2360 = vmatprep.subr.mxu0 %v2751_v0 }
0x15d3   :  { %2361 = vmatpush3.msra.mxu0 %v2808_v3  ;;  %v946_v3 = vld [vmem:[#allocation3 + $0x10] sm:$0xf] }
0x15d4   :  { %2362 = vmatprep.subr.mxu0 %v2751_v0 }
0x15d5   :  { %2363 = vmatpush3.msra.mxu0 %v2813_v4 }
0x15d6   :  { %2364 = vmatprep.subr.mxu0 %v2751_v0 }
0x15d7   :  { %2365 = vmatpush3.msra.mxu0 %v2817_v5 }
0x15d8   :  { %2366 = vmatprep.subr.mxu0 %v2751_v0 }
0x15d9   :  { %2367 = vmatpush3.msra.mxu0 %v2821_v6 }
0x15da   :  { %2368 = vmatprep.subr.mxu0 %v2751_v0 }
0x15db   :  { %2369 = vmatpush3.msra.mxu0 %v2825_v7 }
0x15dc   :  { %2370 = vmatprep.subr.mxu0 %v2751_v0 }
0x15dd   :  { %2371 = vmatpush3.msra.mxu0 %v2829_v8 }
0x15de   :  { %2372 = vmatprep.subr.mxu0 %v2751_v0 }
0x15df   :  { %2373 = vmatpush3.msra.mxu0 %v2833_v9 }
0x15e0   :  { %2396 = vmatprep.subr.mxu0 %v2751_v0 }
0x1690   :  { %v1016_v41 = vpop.f32.mrf.mxu0 }
0x1691   :  { %v1020_v42 = vadd.f32 %v1016_v41, %v946_v3 }
0x1692   :  { %v2338_v44 = vpop.f32.mrf.mxu0 }
0x1693   :  { %1028 = vrot.lane.b32.xlu0 %v1020_v42, %s2753_s0  ;;  %v1996_v45 = vmul.f32 -1.442695, %v1020_v42 }
0x1695   :  { %2555 = vpow2.f32 %v1996_v45 }
0x16a2   :  { %v2556_v46 = vpop.eup %2555 }
0x16a3   :  { %v1024_v47 = vadd.f32 1.0, %v2556_v46 }
0x16a5   :  { %2557 = vrcp.f32 %v1024_v47 }
0x16b2   :  { %v2558_v48 = vpop.eup %2557 }
0x16b3   :  { %v1038_v54 = vsub.f32 1.0, %v2558_v48  ;;  %v1044_v56 = vmul.f32 %v2558_v48, %v3079_v11 }
0x1705   :  { %v1029_v49 = vpop.permute.xlu0 %1028 }
0x1706   :  { %v1031_v50 = vmul.f32 %v2558_v48, %v1029_v49 }
0x1708   :  { %1033 = vrot.lane.b32.xlu1 %v1031_v50, %s2748_s25 }
0x177a   :  { %v1034_v51 = vpop.permute.xlu1 %1033 }
0x177b   :  { %v1036_v52 = vadd.f32 %v1034_v51, %v1020_v42 }
0x177d   :  { %2559 = vtanh.f32 %v1036_v52 }
0x178a   :  { %v2560_v53 = vpop.eup %2559 }
0x178b   :  { %1040 = vrot.lane.b32.xlu0 %v2560_v53, %s2754_s2 }
0x17fd   :  { %v1041_v55 = vpop.permute.xlu0 %1040 }
0x17fe   :  { %v1043_v57 = vmul.f32 %v1041_v55, %v1038_v54 }
0x1800   :  { %v3139_v58 = vadd.f32 %v1044_v56, %v1043_v57  ;;  %v2620_v57 = vld [vmem:[#allocation6 + $0x38] sm:$0xff] }
0x1802   :  { %1047 = vrot.lane.b32.xlu1 %v3139_v58, %s2754_s2 }
0x1874   :  { %v1048_v59 = vpop.permute.xlu1 %1047 }
0x1875   :  { %v1050_v60 = vsel %vm90_vm1, %v1048_v59, %v3109_v38  ;;  %v2622_v59 = vld [vmem:[#allocation6 + $0x20] sm:$0xff] }
0x1876   :  { %2356 = vmatmul.mubr.msk.f32.vlgmr.msra.gmra.mxu1 %vm93_vm2, %v1050_v60  ;;  %v2623_v60 = vld [vmem:[#allocation6 + $0x18] sm:$0xff] }
0x1877   :  { %2378 = vmatpush3.msra.mxu1 %v2864_v25  ;;  %2393 = vmatprep.mubr.msk.f32.mxu1 %vm2752_vm0, %v2751_v0 }
0x1878   :  { %2379 = vmatprep.subr.mxu1 %v2751_v0 }
0x1879   :  { %2380 = vmatpush3.msra.mxu1 %v2866_v26 }
0x187a   :  { %2381 = vmatprep.subr.mxu1 %v2751_v0 }
0x187b   :  { %2382 = vmatpush3.msra.mxu1 %v2870_v27 }
0x187c   :  { %2383 = vmatprep.subr.mxu1 %v2751_v0 }
0x187d   :  { %2384 = vmatpush3.msra.mxu1 %v2874_v28 }
0x187e   :  { %2385 = vmatprep.subr.mxu1 %v2751_v0 }
0x187f   :  { %2386 = vmatpush3.msra.mxu1 %v2878_v29 }
0x1880   :  { %2387 = vmatprep.subr.mxu1 %v2751_v0 }
0x1881   :  { %2388 = vmatpush3.msra.mxu1 %v2882_v31 }
0x1882   :  { %2389 = vmatprep.subr.mxu1 %v2751_v0 }
0x1883   :  { %2390 = vmatpush3.msra.mxu1 %v2887_v33 }
0x1884   :  { %2391 = vmatprep.subr.mxu1 %v2751_v0 }
0x1885   :  { %2392 = vmatpush3.msra.mxu1 %v2894_v34 }
0x1886   :  { %2415 = vmatprep.subr.mxu1 %v2751_v0 }
0x1936   :  { %v1120_v61 = vpop.f32.mrf.mxu1 }
0x1937   :  { %v1124_v62 = vadd.f32 %v2923_v43, %v1120_v61  ;;  %v2624_v61 = vld [vmem:[#allocation6 + $0x10] sm:$0xff] }
0x1938   :  { %v2357_v63 = vpop.f32.mrf.mxu1 }
0x1939   :  { %1132 = vrot.lane.b32.xlu0 %v1124_v62, %s2753_s0  ;;  %v1998_v1 = vmul.f32 -1.442695, %v1124_v62  ;;  %v2626_v63 = vld [vmem:[#allocation6] sm:$0xff] }
0x193b   :  { %2561 = vpow2.f32 %v1998_v1  ;;  %v1368_v1 = vld [vmem:[#allocation3 + $0x18] sm:$0xf] }
0x1948   :  { %v2562_v10 = vpop.eup %2561 }
0x1949   :  { %v1128_v11 = vadd.f32 1.0, %v2562_v10 }
0x194b   :  { %2563 = vrcp.f32 %v1128_v11 }
0x1958   :  { %v2564_v12 = vpop.eup %2563 }
0x1959   :  { %v1142_v18 = vsub.f32 1.0, %v2564_v12  ;;  %v1148_v20 = vmul.f32 %v2564_v12, %v3109_v38 }
0x19ab   :  { %v1133_v13 = vpop.permute.xlu0 %1132 }
0x19ac   :  { %v1135_v14 = vmul.f32 %v2564_v12, %v1133_v13 }
0x19ae   :  { %1137 = vrot.lane.b32.xlu1 %v1135_v14, %s2748_s25 }
0x1a20   :  { %v1138_v15 = vpop.permute.xlu1 %1137 }
0x1a21   :  { %v1140_v16 = vadd.f32 %v1138_v15, %v1124_v62  ;;  %v2625_v62 = vld [vmem:[#allocation6 + $0x8] sm:$0xff] }
0x1a23   :  { %2565 = vtanh.f32 %v1140_v16 }
0x1a30   :  { %v2566_v17 = vpop.eup %2565 }
0x1a31   :  { %1144 = vrot.lane.b32.xlu0 %v2566_v17, %s2754_s2 }
0x1aa3   :  { %v1145_v19 = vpop.permute.xlu0 %1144 }
0x1aa4   :  { %v1147_v21 = vmul.f32 %v1145_v19, %v1142_v18 }
0x1aa6   :  { %v3169_v22 = vadd.f32 %v1148_v20, %v1147_v21 }
0x1aa8   :  { %1151 = vrot.lane.b32.xlu1 %v3169_v22, %s2754_s2 }
0x1b1a   :  { %v1152_v23 = vpop.permute.xlu1 %1151 }
0x1b1b   :  { %1154 = vst.msk [vmem:[#allocation2 + $0x10] sm:$0xf] %vm309_vm3, %v1152_v23  ;;  %v1155_v24 = vsel %vm90_vm1, %v1152_v23, %v3139_v58 }
0x1b1c   :  { %2375 = vmatmul.mubr.msk.f32.vlgmr.msra.gmra.mxu0 %vm93_vm2, %v1155_v24 }
0x1b1d   :  { %2397 = vmatpush3.msra.mxu0 %v2806_v2  ;;  %2412 = vmatprep.mubr.msk.f32.mxu0 %vm2752_vm0, %v2751_v0  ;;  %v1157_v2 = vld [vmem:[#allocation3 + $0x14] sm:$0xf] }
0x1b1e   :  { %2398 = vmatprep.subr.mxu0 %v2751_v0 }
0x1b1f   :  { %2399 = vmatpush3.msra.mxu0 %v3181_v30 }
0x1b20   :  { %2400 = vmatprep.subr.mxu0 %v2751_v0 }
0x1b21   :  { %2401 = vmatpush3.msra.mxu0 %v2813_v4 }
0x1b22   :  { %2402 = vmatprep.subr.mxu0 %v2751_v0 }
0x1b23   :  { %2403 = vmatpush3.msra.mxu0 %v2817_v5 }
0x1b24   :  { %2404 = vmatprep.subr.mxu0 %v2751_v0 }
0x1b25   :  { %2405 = vmatpush3.msra.mxu0 %v2821_v6 }
0x1b26   :  { %2406 = vmatprep.subr.mxu0 %v2751_v0 }
0x1b27   :  { %2407 = vmatpush3.msra.mxu0 %v2825_v7 }
0x1b28   :  { %2408 = vmatprep.subr.mxu0 %v2751_v0 }
0x1b29   :  { %2409 = vmatpush3.msra.mxu0 %v2829_v8 }
0x1b2a   :  { %2410 = vmatprep.subr.mxu0 %v2751_v0 }
0x1b2b   :  { %2411 = vmatpush3.msra.mxu0 %v2833_v9 }
0x1b2c   :  { %2434 = vmatprep.subr.mxu0 %v2751_v0 }
0x1bdc   :  { %v1227_v4 = vpop.f32.mrf.mxu0 }
0x1bdd   :  { %v1231_v5 = vadd.f32 %v1227_v4, %v1157_v2 }
0x1bde   :  { %v2376_v32 = vpop.f32.mrf.mxu0 }
0x1bdf   :  { %1239 = vrot.lane.b32.xlu0 %v1231_v5, %s2753_s0  ;;  %v2000_v6 = vmul.f32 -1.442695, %v1231_v5  ;;  %v2627_v32 = vld [vmem:[#allocation6 + $0x78] sm:$0xff] }
0x1be1   :  { %2567 = vpow2.f32 %v2000_v6  ;;  %v2628_v6 = vld [vmem:[#allocation6 + $0x70] sm:$0xff] }
0x1bee   :  { %v2568_v35 = vpop.eup %2567 }
0x1bef   :  { %v1235_v7 = vadd.f32 1.0, %v2568_v35  ;;  %v2629_v35 = vld [vmem:[#allocation6 + $0x68] sm:$0xff] }
0x1bf1   :  { %2569 = vrcp.f32 %v1235_v7  ;;  %v2630_v7 = vld [vmem:[#allocation6 + $0x60] sm:$0xff] }
0x1bfe   :  { %v2570_v36 = vpop.eup %2569 }
0x1bff   :  { %v1249_v40 = vsub.f32 1.0, %v2570_v36  ;;  %v1255_v41 = vmul.f32 %v2570_v36, %v3139_v58  ;;  %v2621_v58 = vld [vmem:[#allocation6 + $0x28] sm:$0xff] }
0x1c51   :  { %v1240_v37 = vpop.permute.xlu0 %1239 }
0x1c52   :  { %v1242_v8 = vmul.f32 %v2570_v36, %v1240_v37  ;;  %v2631_v36 = vld [vmem:[#allocation6 + $0x58] sm:$0xff]  ;;  %v2632_v37 = vld [vmem:[#allocation6 + $0x50] sm:$0xff] }
0x1c54   :  { %1244 = vrot.lane.b32.xlu1 %v1242_v8, %s2748_s25  ;;  %v2633_v8 = vld [vmem:[#allocation6 + $0x48] sm:$0xff] }
0x1cc6   :  { %v1245_v38 = vpop.permute.xlu1 %1244 }
0x1cc7   :  { %v1247_v9 = vadd.f32 %v1245_v38, %v1231_v5  ;;  %v2634_v38 = vld [vmem:[#allocation6 + $0x40] sm:$0xff] }
0x1cc9   :  { %2571 = vtanh.f32 %v1247_v9 }
0x1cd6   :  { %v2572_v39 = vpop.eup %2571 }
0x1cd7   :  { %1251 = vrot.lane.b32.xlu0 %v2572_v39, %s2754_s2  ;;  %v3269_v39 = vld [vmem:[#allocation6 + $0x80] ss:$0 sm:$0xff] }
0x1d49   :  { %v1252_v3 = vpop.permute.xlu0 %1251 }
0x1d4a   :  { %v1254_v42 = vmul.f32 %v1252_v3, %v1249_v40 }
0x1d4c   :  { %v3201_v44 = vadd.f32 %v1255_v41, %v1254_v42 }
0x1d4e   :  { %1258 = vrot.lane.b32.xlu1 %v3201_v44, %s2754_s2 }
0x1dc0   :  { %v1259_v45 = vpop.permute.xlu1 %1258 }
0x1dc1   :  { %v1261_v46 = vsel %vm90_vm1, %v1259_v45, %v3169_v22 }
0x1dc2   :  { %2394 = vmatmul.mubr.msk.f32.vlgmr.msra.gmra.mxu1 %vm93_vm2, %v1261_v46 }
0x1dc3   :  { %2416 = vmatpush3.msra.mxu1 %v2864_v25  ;;  %2431 = vmatprep.mubr.msk.f32.mxu1 %vm2752_vm0, %v2751_v0 }
0x1dc4   :  { %2417 = vmatprep.subr.mxu1 %v2751_v0 }
0x1dc5   :  { %2418 = vmatpush3.msra.mxu1 %v2866_v26 }
0x1dc6   :  { %2419 = vmatprep.subr.mxu1 %v2751_v0 }
0x1dc7   :  { %2420 = vmatpush3.msra.mxu1 %v2870_v27 }
0x1dc8   :  { %2421 = vmatprep.subr.mxu1 %v2751_v0 }
0x1dc9   :  { %2422 = vmatpush3.msra.mxu1 %v2874_v28 }
0x1dca   :  { %2423 = vmatprep.subr.mxu1 %v2751_v0 }
0x1dcb   :  { %2424 = vmatpush3.msra.mxu1 %v2878_v29 }
0x1dcc   :  { %2425 = vmatprep.subr.mxu1 %v2751_v0 }
0x1dcd   :  { %2426 = vmatpush3.msra.mxu1 %v2882_v31 }
0x1dce   :  { %2427 = vmatprep.subr.mxu1 %v2751_v0 }
0x1dcf   :  { %2428 = vmatpush3.msra.mxu1 %v2887_v33 }
0x1dd0   :  { %2429 = vmatprep.subr.mxu1 %v2751_v0 }
0x1dd1   :  { %2430 = vmatpush3.msra.mxu1 %v2894_v34 }
0x1dd2   :  { %2453 = vmatprep.subr.mxu1 %v2751_v0 }
0x1e82   :  { %v1331_v25 = vpop.f32.mrf.mxu1 }
0x1e83   :  { %v1335_v26 = vadd.f32 %v2923_v43, %v1331_v25 }
0x1e84   :  { %v2395_v27 = vpop.f32.mrf.mxu1 }
0x1e85   :  { %1343 = vrot.lane.b32.xlu0 %v1335_v26, %s2753_s0  ;;  %v2002_v28 = vmul.f32 -1.442695, %v1335_v26 }
0x1e87   :  { %2573 = vpow2.f32 %v2002_v28  ;;  %v79_v28 = vld [vmem:[#allocation6 + $0xa0] sm:$0xff] }
0x1e94   :  { %v2574_v29 = vpop.eup %2573 }
0x1e95   :  { %v1339_v31 = vadd.f32 1.0, %v2574_v29 }
0x1e97   :  { %2575 = vrcp.f32 %v1339_v31 }
0x1ea4   :  { %v2576_v47 = vpop.eup %2575 }
0x1ea5   :  { %v1353_v43 = vsub.f32 1.0, %v2576_v47  ;;  %v1359_v52 = vmul.f32 %v2576_v47, %v3169_v22 }
0x1ef7   :  { %v1344_v48 = vpop.permute.xlu0 %1343 }
0x1ef8   :  { %v1346_v33 = vmul.f32 %v2576_v47, %v1344_v48 }
0x1efa   :  { %1348 = vrot.lane.b32.xlu1 %v1346_v33, %s2748_s25 }
0x1f6c   :  { %v1349_v49 = vpop.permute.xlu1 %1348 }
0x1f6d   :  { %v1351_v34 = vadd.f32 %v1349_v49, %v1335_v26 }
0x1f6f   :  { %2577 = vtanh.f32 %v1351_v34 }
0x1f7c   :  { %v2578_v50 = vpop.eup %2577 }
0x1f7d   :  { %1355 = vrot.lane.b32.xlu0 %v2578_v50, %s2754_s2  ;;  %v78_v50 = vld [vmem:[#allocation6 + $0x98] sm:$0xff] }
0x1fef   :  { %v1356_v51 = vpop.permute.xlu0 %1355 }
0x1ff0   :  { %v1358_v53 = vmul.f32 %v1356_v51, %v1353_v43  ;;  %v1791_v43 = vld [vmem:[#allocation2] sm:$0xff]  ;;  %v77_v51 = vld [vmem:[#allocation6 + $0x90] sm:$0xff] }
0x1ff2   :  { %v3231_v54 = vadd.f32 %v1359_v52, %v1358_v53  ;;  %v76_v52 = vld [vmem:[#allocation6 + $0x88] sm:$0xff] }
0x1ff3   :  { %v1792_v53 = vld [vmem:[#allocation2 + $0x8] sm:$0xff] }
0x1ff4   :  { %1362 = vrot.lane.b32.xlu1 %v3231_v54, %s2754_s2 }
0x2066   :  { %v1363_v55 = vpop.permute.xlu1 %1362 }
0x2067   :  { %1365 = vst.msk [vmem:[#allocation2 + $0x14] sm:$0xf] %vm309_vm3, %v1363_v55  ;;  %v1366_v56 = vsel %vm90_vm1, %v1363_v55, %v3201_v44 }
0x2068   :  { %2413 = vmatmul.mubr.msk.f32.vlgmr.msra.gmra.mxu0 %vm93_vm2, %v1366_v56 }
0x2069   :  { %2435 = vmatpush3.msra.mxu0 %v2620_v57  ;;  %2450 = vmatprep.mubr.msk.f32.mxu0 %vm2752_vm0, %v2751_v0 }
0x206a   :  { %2436 = vmatprep.subr.mxu0 %v2751_v0 }
0x206b   :  { %2437 = vmatpush3.msra.mxu0 %v3181_v30 }
0x206c   :  { %2438 = vmatprep.subr.mxu0 %v2751_v0 }
0x206d   :  { %2439 = vmatpush3.msra.mxu0 %v2621_v58 }
0x206e   :  { %2440 = vmatprep.subr.mxu0 %v2751_v0 }
0x206f   :  { %2441 = vmatpush3.msra.mxu0 %v2622_v59 }
0x2070   :  { %2442 = vmatprep.subr.mxu0 %v2751_v0 }
0x2071   :  { %2443 = vmatpush3.msra.mxu0 %v2623_v60 }
0x2072   :  { %2444 = vmatprep.subr.mxu0 %v2751_v0 }
0x2073   :  { %2445 = vmatpush3.msra.mxu0 %v2624_v61 }
0x2074   :  { %2446 = vmatprep.subr.mxu0 %v2751_v0 }
0x2075   :  { %2447 = vmatpush3.msra.mxu0 %v2625_v62 }
0x2076   :  { %2448 = vmatprep.subr.mxu0 %v2751_v0 }
0x2077   :  { %2449 = vmatpush3.msra.mxu0 %v2626_v63 }
0x2078   :  { %2472 = vmatprep.subr.mxu0 %v79_v28 }
0x2128   :  { %v1438_v10 = vpop.f32.mrf.mxu0 }
0x2129   :  { %v1442_v11 = vadd.f32 %v1438_v10, %v1368_v1 }
0x212a   :  { %v2414_v12 = vpop.f32.mrf.mxu0 }
0x212b   :  { %1450 = vrot.lane.b32.xlu0 %v1442_v11, %s2753_s0  ;;  %v2004_v13 = vmul.f32 -1.442695, %v1442_v11 }
0x212d   :  { %2579 = vpow2.f32 %v2004_v13 }
0x213a   :  { %v2580_v14 = vpop.eup %2579 }
0x213b   :  { %v1446_v15 = vadd.f32 1.0, %v2580_v14 }
0x213d   :  { %2581 = vrcp.f32 %v1446_v15 }
0x214a   :  { %v2582_v16 = vpop.eup %2581 }
0x214b   :  { %v1460_v22 = vsub.f32 1.0, %v2582_v16  ;;  %v1466_v24 = vmul.f32 %v2582_v16, %v3201_v44 }
0x219d   :  { %v1451_v17 = vpop.permute.xlu0 %1450 }
0x219e   :  { %v1453_v18 = vmul.f32 %v2582_v16, %v1451_v17 }
0x21a0   :  { %1455 = vrot.lane.b32.xlu1 %v1453_v18, %s2748_s25 }
0x2212   :  { %v1456_v19 = vpop.permute.xlu1 %1455 }
0x2213   :  { %v1458_v20 = vadd.f32 %v1456_v19, %v1442_v11  ;;  %v1793_v19 = vld [vmem:[#allocation2 + $0x10] sm:$0xff] }
0x2215   :  { %2583 = vtanh.f32 %v1458_v20 }
0x2222   :  { %v2584_v21 = vpop.eup %2583 }
0x2223   :  { %1462 = vrot.lane.b32.xlu0 %v2584_v21, %s2754_s2 }
0x2295   :  { %v1463_v23 = vpop.permute.xlu0 %1462 }
0x2296   :  { %v1465_v30 = vmul.f32 %v1463_v23, %v1460_v22 }
0x2298   :  { %v3253_v2 = vadd.f32 %v1466_v24, %v1465_v30 }
0x229a   :  { %1469 = vrot.lane.b32.xlu1 %v3253_v2, %s2754_s2 }
0x230c   :  { %v1470_v4 = vpop.permute.xlu1 %1469 }
0x230d   :  { %v1472_v5 = vsel %vm90_vm1, %v1470_v4, %v3231_v54 }
0x230e   :  { %2432 = vmatmul.mubr.msk.f32.vlgmr.msra.gmra.mxu1 %vm93_vm2, %v1472_v5 }
0x230f   :  { %2454 = vmatpush3.msra.mxu1 %v2627_v32  ;;  %2469 = vmatprep.mubr.msk.f32.mxu1 %vm2752_vm0, %v2751_v0 }
0x2310   :  { %2455 = vmatprep.subr.mxu1 %v2751_v0 }
0x2311   :  { %2456 = vmatpush3.msra.mxu1 %v2628_v6 }
0x2312   :  { %2457 = vmatprep.subr.mxu1 %v2751_v0 }
0x2313   :  { %2458 = vmatpush3.msra.mxu1 %v2629_v35 }
0x2314   :  { %2459 = vmatprep.subr.mxu1 %v2751_v0 }
0x2315   :  { %2460 = vmatpush3.msra.mxu1 %v2630_v7 }
0x2316   :  { %2461 = vmatprep.subr.mxu1 %v2751_v0 }
0x2317   :  { %2462 = vmatpush3.msra.mxu1 %v2631_v36 }
0x2318   :  { %2463 = vmatprep.subr.mxu1 %v2751_v0 }
0x2319   :  { %2464 = vmatpush3.msra.mxu1 %v2632_v37  ;;  %v2011_v37 = vld [vmem:[#allocation6 + $0xa8] ss:$0 sm:$0xff] }
0x231a   :  { %2465 = vmatprep.subr.mxu1 %v2751_v0 }
0x231b   :  { %2466 = vmatpush3.msra.mxu1 %v2633_v8 }
0x231c   :  { %2467 = vmatprep.subr.mxu1 %v2751_v0 }
0x231d   :  { %2468 = vmatpush3.msra.mxu1 %v2634_v38 }
0x231e   :  { %2486 = vmatprep.subr.mxu1 %v79_v28 }
0x23ce   :  { %v1542_v9 = vpop.f32.mrf.mxu1 }
0x23cf   :  { %v1546_v40 = vadd.f32 %v3269_v39, %v1542_v9 }
0x23d0   :  { %v2433_v3 = vpop.f32.mrf.mxu1 }
0x23d1   :  { %1554 = vrot.lane.b32.xlu0 %v1546_v40, %s2753_s0  ;;  %v2006_v41 = vmul.f32 -1.442695, %v1546_v40 }
0x23d3   :  { %2585 = vpow2.f32 %v2006_v41 }
0x23e0   :  { %v2586_v42 = vpop.eup %2585 }
0x23e1   :  { %v1550_v44 = vadd.f32 1.0, %v2586_v42 }
0x23e3   :  { %2587 = vrcp.f32 %v1550_v44 }
0x23f0   :  { %v2588_v45 = vpop.eup %2587 }
0x23f1   :  { %v1564_v29 = vsub.f32 1.0, %v2588_v45  ;;  %v1570_v47 = vmul.f32 %v2588_v45, %v3231_v54  ;;  %v1579_v54 = vld [vmem:[#allocation3 + $0x1c] sm:$0xf] }
0x2443   :  { %v1555_v46 = vpop.permute.xlu0 %1554 }
0x2444   :  { %v1557_v25 = vmul.f32 %v2588_v45, %v1555_v46 }
0x2446   :  { %1559 = vrot.lane.b32.xlu1 %v1557_v25, %s2748_s25 }
0x24b8   :  { %v1560_v0 = vpop.permute.xlu1 %1559 }
0x24b9   :  { %v1562_v26 = vadd.f32 %v1560_v0, %v1546_v40 }
0x24bb   :  { %2589 = vtanh.f32 %v1562_v26 }
0x24c8   :  { %v2590_v27 = vpop.eup %2589 }
0x24c9   :  { %1566 = vrot.lane.b32.xlu0 %v2590_v27, %s2754_s2 }
0x253b   :  { %v1567_v31 = vpop.permute.xlu0 %1566 }
0x253c   :  { %v1569_v48 = vmul.f32 %v1567_v31, %v1564_v29 }
0x253e   :  { %v3276_v33 = vadd.f32 %v1570_v47, %v1569_v48 }
0x2540   :  { %1573 = vrot.lane.b32.xlu1 %v3276_v33, %s2754_s2 }
0x25b2   :  { %v1574_v49 = vpop.permute.xlu1 %1573 }
0x25b3   :  { %1576 = vst.msk [vmem:[#allocation2 + $0x18] sm:$0xf] %vm309_vm3, %v1574_v49  ;;  %v1577_v34 = vsel %vm90_vm1, %v1574_v49, %v3253_v2 }
0x25b4   :  { %2451 = vmatmul.mubr.msk.f32.vlgmr.msra.gmra.mxu0 %vm93_vm2, %v1577_v34 }
0x25b5   :  { %2473 = vmatpush3.msra.mxu0 %v79_v28  ;;  %2480 = vmatprep.mubr.msk.f32.mxu0 %vm90_vm1, %v1791_v43 }
0x25b6   :  { %2474 = vmatprep.subr.mxu0 %v78_v50 }
0x25b7   :  { %2475 = vmatpush3.msra.mxu0 %v78_v50 }
0x25b8   :  { %2476 = vmatprep.subr.mxu0 %v77_v51 }
0x25b9   :  { %2477 = vmatpush3.msra.mxu0 %v77_v51 }
0x25ba   :  { %2478 = vmatprep.subr.mxu0 %v76_v52 }
0x25bb   :  { %2479 = vmatpush3.msra.mxu0 %v76_v52 }
0x25bc   :  { %2481 = vmatmul.mubr.msk.f32.vlgmr.msra.gmra.mxu0 %vm90_vm1, %v1792_v53 }
0x2674   :  { %v1649_v55 = vpop.f32.mrf.mxu0 }
0x2675   :  { %v1653_v56 = vadd.f32 %v1649_v55, %v1579_v54 }
0x2676   :  { %v2452_v57 = vpop.f32.mrf.mxu0 }
0x2677   :  { %1661 = vrot.lane.b32.xlu0 %v1653_v56, %s2753_s0  ;;  %v2008_v58 = vmul.f32 -1.442695, %v1653_v56 }
0x2679   :  { %2591 = vpow2.f32 %v2008_v58 }
0x267c   :  { %v2482_v7 = vpop.f32.mrf.mxu0 }
0x267d   :  { %v1883_v41 = vadd.f32 %v2482_v7, %v2011_v37 }
0x267e   :  { %v1877_v36 = vpop.f32.mrf.mxu0 }
0x267f   :  { %v1878_v8 = vadd.f32 %v2011_v37, %v1877_v36 }
0x2686   :  { %v2592_v59 = vpop.eup %2591 }
0x2687   :  { %v1657_v60 = vadd.f32 1.0, %v2592_v59 }
0x2689   :  { %2593 = vrcp.f32 %v1657_v60 }
0x2696   :  { %v2594_v61 = vpop.eup %2593 }
0x2697   :  { %v1671_v12 = vsub.f32 1.0, %v2594_v61  ;;  %v1677_v14 = vmul.f32 %v2594_v61, %v3253_v2 }
0x26e9   :  { %v1662_v62 = vpop.permute.xlu0 %1661 }
0x26ea   :  { %v1664_v63 = vmul.f32 %v2594_v61, %v1662_v62 }
0x26ec   :  { %1666 = vrot.lane.b32.xlu1 %v1664_v63, %s2748_s25 }
0x275e   :  { %v1667_v1 = vpop.permute.xlu1 %1666 }
0x275f   :  { %v1669_v10 = vadd.f32 %v1667_v1, %v1653_v56 }
0x2761   :  { %2595 = vtanh.f32 %v1669_v10 }
0x276e   :  { %v2596_v11 = vpop.eup %2595 }
0x276f   :  { %1673 = vrot.lane.b32.xlu0 %v2596_v11, %s2754_s2 }
0x27e1   :  { %v1674_v13 = vpop.permute.xlu0 %1673 }
0x27e2   :  { %v1676_v15 = vmul.f32 %v1674_v13, %v1671_v12 }
0x27e4   :  { %v1678_v16 = vadd.f32 %v1677_v14, %v1676_v15 }
0x27e6   :  { %1680 = vrot.lane.b32.xlu1 %v1678_v16, %s2754_s2 }
0x2858   :  { %v1681_v17 = vpop.permute.xlu1 %1680 }
0x2859   :  { %v1683_v18 = vsel %vm90_vm1, %v1681_v17, %v3276_v33  ;;  %1788 = vst.msk [vmem:[#allocation10] sm:$0xf] %vm309_vm3, %v1681_v17 }
0x285a   :  { %2470 = vmatmul.mubr.msk.f32.vlgmr.msra.gmra.mxu1 %vm93_vm2, %v1683_v18 }
0x285b   :  { %2483 = vmatprep.mubr.msk.f32.mxu1 %vm90_vm1, %v1793_v19  ;;  %2490 = vmatpush3.msra.mxu1 %v79_v28 }
0x285c   :  { %2487 = vmatprep.subr.mxu1 %v78_v50 }
0x285d   :  { %2491 = vmatpush3.msra.mxu1 %v78_v50 }
0x285e   :  { %2488 = vmatprep.subr.mxu1 %v77_v51 }
0x285f   :  { %2492 = vmatpush3.msra.mxu1 %v77_v51 }
0x2860   :  { %2489 = vmatprep.subr.mxu1 %v76_v52 }
0x2861   :  { %2493 = vmatpush3.msra.mxu1 %v76_v52 }
0x291a   :  { %v1753_v20 = vpop.f32.mrf.mxu1 }
0x291b   :  { %v1757_v21 = vadd.f32 %v3269_v39, %v1753_v20 }
0x291c   :  { %v2471_v22 = vpop.f32.mrf.mxu1 }
0x291d   :  { %1765 = vrot.lane.b32.xlu0 %v1757_v21, %s2753_s0  ;;  %v2010_v23 = vmul.f32 -1.442695, %v1757_v21 }
0x291f   :  { %2597 = vpow2.f32 %v2010_v23 }
0x292c   :  { %v2598_v24 = vpop.eup %2597 }
0x292d   :  { %v1761_v30 = vadd.f32 1.0, %v2598_v24 }
0x292f   :  { %2599 = vrcp.f32 %v1761_v30 }
0x293c   :  { %v2600_v2 = vpop.eup %2599 }
0x293d   :  { %v1775_v38 = vsub.f32 1.0, %v2600_v2  ;;  %v1781_v39 = vmul.f32 %v2600_v2, %v3276_v33 }
0x298f   :  { %v1766_v4 = vpop.permute.xlu0 %1765 }
0x2990   :  { %v1768_v5 = vmul.f32 %v2600_v2, %v1766_v4 }
0x2992   :  { %1770 = vrot.lane.b32.xlu1 %v1768_v5, %s2748_s25 }
0x2a04   :  { %v1771_v32 = vpop.permute.xlu1 %1770 }
0x2a05   :  { %v1773_v6 = vadd.f32 %v1771_v32, %v1757_v21 }
0x2a07   :  { %2601 = vtanh.f32 %v1773_v6 }
0x2a14   :  { %v2602_v35 = vpop.eup %2601 }
0x2a15   :  { %1777 = vrot.lane.b32.xlu0 %v2602_v35, %s2754_s2 }
0x2a34   :  { %1896 = vmax.xlane.f32.xlu0 %v1878_v8 }
0x2a87   :  { %v1778_v9 = vpop.permute.xlu0 %1777 }
0x2a88   :  { %v1780_v40 = vmul.f32 %v1778_v9, %v1775_v38 }
0x2a8a   :  { %v1782_v3 = vadd.f32 %v1781_v39, %v1780_v40 }
0x2a8c   :  { %1784 = vrot.lane.b32.xlu1 %v1782_v3, %s2754_s2 }
0x2ab0   :  { %1898 = vmax.xlane.f32.xlu1 %v1883_v41 }
0x2abd   :  { %v1897_v42 = vpop.xlane.xlu0 %1896 }
0x2abe   :  { %v1904_v44 = vsub.f32 %v1878_v8, %v1897_v42 }
0x2ac0   :  { %v1908_v45 = vmul.f32 1.442695, %v1904_v44 }
0x2ac2   :  { %2603 = vpow2.f32 %v1908_v45 }
0x2acf   :  { %v2604_v46 = vpop.eup %2603 }
0x2ad0   :  { %1916 = vadd.xlane.f32.xlu1 %v2604_v46 }
0x2afe   :  { %v1785_v25 = vpop.permute.xlu1 %1784 }
0x2aff   :  { %1787 = vst.msk [vmem:[#allocation2 + $0x1c] sm:$0xf] %vm309_vm3, %v1785_v25  ;;  %1790 = vst.msk [vmem:[#allocation10 + $0x4] sm:$0xf] %vm309_vm3, %v1785_v25 }
0x2b06   :  { %v1794_v0 = vld [vmem:[#allocation2 + $0x18] sm:$0xff] }
0x2b07   :  { %2484 = vmatmul.mubr.msk.f32.vlgmr.msra.gmra.mxu1 %vm90_vm1, %v1794_v0 }
0x2b39   :  { %v1899_v26 = vpop.xlane.xlu1 %1898 }
0x2b3a   :  { %v1905_v48 = vsub.f32 %v1883_v41, %v1899_v26 }
0x2b3c   :  { %v1910_v33 = vmul.f32 1.442695, %v1905_v48 }
0x2b59   :  { %v1917_v27 = vpop.xlane.xlu1 %1916 }
0x2b5a   :  { %2605 = vlog2.f32 %v1917_v27 }
0x2b5b   :  { %2607 = vpow2.f32 %v1910_v33 }
0x2b67   :  { %v2606_v28 = vpop.eup %2605 }
0x2b68   :  { %v1925_v29 = vmul.f32 0.6931472, %v2606_v28  ;;  %v2608_v51 = vpop.eup %2607 }
0x2b6a   :  { %v1932_v31 = vadd.f32 %v1925_v29, %v1897_v42 }
0x2b6c   :  { %v1936_v47 = vsub.f32 %v1878_v8, %v1932_v31 }
0x2b6e   :  { %1940 = vst [vmem:[#allocation9] sm:$0xff] %v1936_v47 }
0x2bc7   :  { %v2485_v49 = vpop.f32.mrf.mxu1 }
0x2bc8   :  { %v1893_v43 = vadd.f32 %v2485_v49, %v2011_v37 }
0x2bc9   :  { %v1887_v34 = vpop.f32.mrf.mxu1 }
0x2bca   :  { %v1888_v50 = vadd.f32 %v2011_v37, %v1887_v34 }
0x2bcc   :  { %1900 = vmax.xlane.f32.xlu0 %v1888_v50 }
0x2bd0   :  { %1902 = vmax.xlane.f32.xlu0 %v1893_v43 }
0x2bd4   :  { %1918 = vadd.xlane.f32.xlu0 %v2608_v51 }
0x2c55   :  { %v1901_v52 = vpop.xlane.xlu0 %1900 }
0x2c56   :  { %v1906_v53 = vsub.f32 %v1888_v50, %v1901_v52 }
0x2c58   :  { %v1912_v54 = vmul.f32 1.442695, %v1906_v53 }
0x2c59   :  { %v1903_v55 = vpop.xlane.xlu0 %1902 }
0x2c5a   :  { %2609 = vpow2.f32 %v1912_v54  ;;  %v1907_v56 = vsub.f32 %v1893_v43, %v1903_v55 }
0x2c5c   :  { %v1914_v57 = vmul.f32 1.442695, %v1907_v56 }
0x2c5d   :  { %v1919_v58 = vpop.xlane.xlu0 %1918 }
0x2c5e   :  { %2611 = vpow2.f32 %v1914_v57 }
0x2c5f   :  { %2613 = vlog2.f32 %v1919_v58 }
0x2c67   :  { %v2610_v59 = vpop.eup %2609 }
0x2c68   :  { %1920 = vadd.xlane.f32.xlu1 %v2610_v59 }
0x2c6b   :  { %v2612_v60 = vpop.eup %2611 }
0x2c6c   :  { %v2614_v61 = vpop.eup %2613  ;;  %1922 = vadd.xlane.f32.xlu0 %v2612_v60 }
0x2c6d   :  { %v1927_v62 = vmul.f32 0.6931472, %v2614_v61 }
0x2c6f   :  { %v1933_v63 = vadd.f32 %v1927_v62, %v1899_v26 }
0x2c71   :  { %v1937_v1 = vsub.f32 %v1883_v41, %v1933_v63 }
0x2c73   :  { %1941 = vst [vmem:[#allocation9 + $0x8] sm:$0xff] %v1937_v1 }
0x2c74   :  { %2707 = shalt.err (!%p2704_p5)
}
0x2c75   :  { %1967 = dma.vmem_to_hbm [thread:$0]  %s1962_s8, 128, %s3321_s4, [#allocation11], %s2748_s25, %s2748_s25, %s2749_s26  }
0x2c76   :  { %s2756_s12 = smov [#allocation9]  }
0x2c77   :  { %s1949_s13 = sshll.u32 %s2756_s12, 4  ;;  %s1950_s13 = int_to_ptr.vmem [resolvable:$true] %s1949_s13 }
0x2c78   :  { %s2716_s14 = scalar_lea.vmem %s1950_s13, 512  ;;  %p2721_p7 = scmp.lt.s32.totalorder %s1950_s13, %s1950_s13 }
0x2c79   :  { %p2717_p6 = scmp.ne.s32.totalorder %s1950_s13, %s2716_s14  ;;  %p2722_p8 = scmp.lt.s32.totalorder %s2716_s14, %s2716_s14 }
0x2c7b   :  { %p2723_p9 = por %p2722_p8, %p2721_p7 }
0x2c7d   :  { %p2724_p10 = pnand %p2723_p9, %p2717_p6 }
0x2cf1   :  { %v1921_v10 = vpop.xlane.xlu1 %1920 }
0x2cf2   :  { %2615 = vlog2.f32 %v1921_v10 }
0x2cf5   :  { %v1923_v11 = vpop.xlane.xlu0 %1922 }
0x2cf6   :  { %2617 = vlog2.f32 %v1923_v11 }
0x2cff   :  { %v2616_v12 = vpop.eup %2615 }
0x2d00   :  { %v1929_v13 = vmul.f32 0.6931472, %v2616_v12 }
0x2d02   :  { %v1934_v14 = vadd.f32 %v1929_v13, %v1901_v52 }
0x2d03   :  { %v2618_v15 = vpop.eup %2617 }
0x2d04   :  { %v1938_v16 = vsub.f32 %v1888_v50, %v1934_v14  ;;  %v1931_v17 = vmul.f32 0.6931472, %v2618_v15 }
0x2d06   :  { %1942 = vst [vmem:[#allocation9 + $0x10] sm:$0xff] %v1938_v16  ;;  %v1935_v18 = vadd.f32 %v1931_v17, %v1903_v55 }
0x2d08   :  { %v1939_v19 = vsub.f32 %v1893_v43, %v1935_v18 }
0x2d0a   :  { %1943 = vst [vmem:[#allocation9 + $0x18] sm:$0xff] %v1939_v19 }
0x2d0b   :  { %2727 = shalt.err (!%p2724_p10)
}
0x2d0c   :  { %1955 = dma.vmem_to_hbm [thread:$0]  %s1950_s13, 512, %s3320_s3, [#allocation5], %s2745_s18, %s2745_s18, %s2746_s19  }
0x2d0d   :  { %2740 = dma.done.wait [#allocation5], 512  }
0x2d0e   :  { %2741 = vsyncadd [#allocation5], 4294966784 }
0x2d0f   :  { %2742 = dma.done.wait [#allocation11], 128  }
0x2d10   :  { %2743 = vsyncadd [#allocation11], 4294967168 }
0x2d11   :  { %1974 = vsyncpa [#allocation4], 1 }
0x2d12   :  { %1975 = vsyncpa [#allocation7], 1 }
0x2d13   :  { %1976 = vsyncpa [#allocation5], 1 }
0x2d14   :  { %1977 = vsyncpa [#allocation11], 1 }

</bundles_post_ra>
